<compile_context>
chip_gen: v5e
topology: v5e:2x2
jax: 0.10.0
libtpu: 0.0.40
codegen_flags: <defaults>
</compile_context>

<pallas_src>
import numpy as np
import jax
import jax.numpy as jnp
from jax.experimental import pallas as pl
from jax.experimental.pallas import tpu as pltpu

# ---------------- configuration (small shapes consistent with the module) ----
F_IN = 16        # num_node_features
H = 32           # hidden_channels
NH = 8           # num_heads
HD = H // NH     # head_dim
L = 2            # num_layers
C = 3            # num_classes (>2 -> final_linear H->C, softmax(dim=1))
S = 8            # per-graph sequence length (equal lengths -> no padding)
B = 2            # batch_size (number of graphs)
N = S * B        # total nodes = 16
FF = 4 * H       # feed-forward width = 128
SW = NH * N      # attention score-slab lane width = 128 (fully lane dense)
OUT_LANES = 128  # lane-dense padded output width
PE_LEN = 512
EPS_LN = 1e-5
EPS_BN = 1e-5
SCALE = 1.0 / float(np.sqrt(HD))
NEG = -1e30

# TODO(synk): use_bilstm=True (LSTM) path and graph_level global_mean_pool are
# default-off in the module and are not implemented here.

# ---------------- packed-slab row layout (all offsets are multiples of 8) ----
# 32-lane slab  [S32_ROWS, 32]
R32_PE = 0                                   # [512, 32] positional-encoding table
R32_EMB_W = R32_PE + PE_LEN                  # 512   [16, 32]
R32_LAYER = R32_EMB_W + F_IN                 # 528
PER32 = 4 * H + FF                           # 256 rows per layer
O32_QW, O32_KW, O32_VW, O32_OW, O32_F2W = 0, H, 2 * H, 3 * H, 4 * H
R32_VSEL = R32_LAYER + L * PER32             # 1040  [128, 32]
R32_REPV = R32_VSEL + SW                     # 1168  [128, 32] (lanes [0:16) valid)
S32_ROWS = R32_REPV + SW                     # 1296

# 128-lane slab [S128_ROWS, 128]
PER128 = 48                                  # rows per layer (padded to 8-multiple)
O128_F1W = 0                                 # [32, 128]
O128_F1B = 32
O128_QB, O128_KB, O128_VB, O128_OB, O128_F2B = 33, 34, 35, 36, 37
O128_L1G, O128_L1B, O128_L2G, O128_L2B = 38, 39, 40, 41
R128_HEAD = L * PER128                       # 96
R128_EMB_B = R128_HEAD + 0
R128_BN_S = R128_HEAD + 1                    # folded BN scale
R128_BN_B = R128_HEAD + 2                    # folded BN shift
R128_FIN_B = R128_HEAD + 3                   # padded lanes = -1e30
R128_FIN_W = R128_HEAD + 8                   # 104   [32, 128] (lanes >= C zero)
R128_KSEL = R128_FIN_W + H                   # 136   [32, 128]
R128_MASK = R128_KSEL + H                    # 168   [16, 128] additive graph mask
R128_REPK = R128_MASK + N                    # 184   [16, 128]
R128_SEG = R128_REPK + N                     # 200   [128, 128]
S128_ROWS = R128_SEG + SW                    # 328


# ---------------------------- fused Pallas kernel -----------------------------
def _fused_forward_kernel(pos_ref, x_ref, s32_ref, s128_ref, o_ref, pe_scr):
    f32 = jnp.float32

    def dot(a, b):
        return jnp.dot(a, b, preferred_element_type=f32)

    def cvec(r):      # [1, H] constant row (lanes [0:H) of one slab128 row)
        return s128_ref[r:r + 1, 0:H]

    def cvec128(r):   # [1, 128] constant row
        return s128_ref[r:r + 1, :]

    def layer_norm(x, g, b):
        mu = jnp.mean(x, axis=-1, keepdims=True)
        xc = x - mu
        var = jnp.mean(xc * xc, axis=-1, keepdims=True)
        return xc * jax.lax.rsqrt(var + EPS_LN) * g + b

    # --- positional-encoding gather folded into the kernel (scalar prefetch) --
    # pos lives in SMEM; the 512x32 PE table is resident at slab32 rows [0:512).
    for i in range(N):
        pe_scr[pl.ds(i, 1), :] = s32_ref[pl.ds(pos_ref[i], 1), :]

    # --- input embedding + positional encoding (dropout = identity) ----------
    h = dot(x_ref[...], s32_ref[R32_EMB_W:R32_EMB_W + F_IN, :]) + cvec(R128_EMB_B)
    h = h + pe_scr[...]

    def attention(q, k, v):
        # VMEM-resident precomputed constants (loaded at use -> no long-lived
        # vregs held across the two layers).
        k_sel = s128_ref[R128_KSEL:R128_KSEL + H, :]          # [H, SW]
        mask_add = s128_ref[R128_MASK:R128_MASK + N, :]       # [N, SW]
        rep_k = s128_ref[R128_REPK:R128_REPK + N, :]          # [N, SW]
        seg_sum = s128_ref[R128_SEG:R128_SEG + SW, :]         # [SW, SW]
        v_sel = s32_ref[R32_VSEL:R32_VSEL + SW, :]            # [SW, H]
        rep_v = s32_ref[R32_REPV:R32_REPV + SW, 0:N]          # [SW, N]

        # Block-diagonal K^T / V built by MXU replication matmuls (no concats).
        kbd = dot(k.T, rep_k) * k_sel                         # [H, SW]
        scores = dot(q, kbd) + mask_add                       # [N, SW]; scale folded in q
        m = jnp.max(scores, axis=-1, keepdims=True)           # global row max
        e = jnp.exp(scores - m)
        denom = dot(e, seg_sum)                               # per-head-block sums
        denom = jnp.maximum(denom, 1e-30)                     # guard underflowed block
        r = pl.reciprocal(denom, approx=True)                 # EUP slot
        r = r * (2.0 - denom * r)                             # Newton step -> ~f32 exact
        p = e * r
        vbd = dot(rep_v, v) * v_sel                           # [SW, H]
        return dot(p, vbd)                                    # [N, H]

    # --- transformer encoder stack (post-norm, relu FFN) ----------------------
    for l in range(L):
        b32 = R32_LAYER + l * PER32
        b128 = l * PER128
        q = dot(h, s32_ref[b32 + O32_QW:b32 + O32_QW + H, :]) + cvec(b128 + O128_QB)
        k = dot(h, s32_ref[b32 + O32_KW:b32 + O32_KW + H, :]) + cvec(b128 + O128_KB)
        v = dot(h, s32_ref[b32 + O32_VW:b32 + O32_VW + H, :]) + cvec(b128 + O128_VB)
        a = attention(q, k, v)
        a = dot(a, s32_ref[b32 + O32_OW:b32 + O32_OW + H, :]) + cvec(b128 + O128_OB)
        x1 = layer_norm(h + a, cvec(b128 + O128_L1G), cvec(b128 + O128_L1B))
        ff = dot(x1, s128_ref[b128 + O128_F1W:b128 + O128_F1W + H, :]) \
            + cvec128(b128 + O128_F1B)                         # [N, 128]
        ff = jnp.maximum(ff, 0.0)
        ff = dot(ff, s32_ref[b32 + O32_F2W:b32 + O32_F2W + FF, :]) \
            + cvec(b128 + O128_F2B)
        h = layer_norm(x1 + ff, cvec(b128 + O128_L2G), cvec(b128 + O128_L2B))

    # --- head: folded eval-BatchNorm -> ReLU -> Linear (padded) -> Softmax ----
    hh = jnp.maximum(h * cvec(R128_BN_S) + cvec(R128_BN_B), 0.0)
    logits = dot(hh, s128_ref[R128_FIN_W:R128_FIN_W + H, :]) + cvec128(R128_FIN_B)
    logits = logits - jnp.max(logits, axis=-1, keepdims=True)
    e = jnp.exp(logits)                                        # pad lanes -> exactly 0
    o_ref[...] = e / jnp.sum(e, axis=-1, keepdims=True)        # lane-dense [N, 128] store


# ---------------------------- Pallas wrapper ----------------------------------
def fused_forward_pallas(pos, x, slab32, slab128):
    # Grid-less single call (grid=(1,)). Inputs: 1 SMEM scalar prefetch (pos)
    # + 3 VMEM DMAs (x, slab32, slab128). Total VMEM footprint < 1 MiB, well
    # under default scoped limits on v5e/v6e/v7x.
    # TODO(synk): for batched inference (many graphs per call) add a leading
    # "parallel" grid axis over graph blocks so v7x's two TensorCores are used
    # and the MXU M-dim reaches >=128/256 rows.
    return pl.pallas_call(
        _fused_forward_kernel,
        out_shape=jax.ShapeDtypeStruct((N, OUT_LANES), jnp.float32),
        grid_spec=pltpu.PrefetchScalarGridSpec(
            num_scalar_prefetch=1,
            grid=(1,),
            in_specs=[
                pl.BlockSpec((N, F_IN), lambda i, pos_ref: (0, 0)),
                pl.BlockSpec((S32_ROWS, H), lambda i, pos_ref: (0, 0)),
                pl.BlockSpec((S128_ROWS, OUT_LANES), lambda i, pos_ref: (0, 0)),
            ],
            out_specs=pl.BlockSpec((N, OUT_LANES), lambda i, pos_ref: (0, 0)),
            scratch_shapes=[pltpu.VMEM((N, H), jnp.float32)],
        ),
        compiler_params=pltpu.CompilerParams(dimension_semantics=("arbitrary",)),
    )(pos, x, slab32, slab128)


# ---------------------------- model forward -----------------------------------
def _positions_from_chain_index(chain_index):
    # Per-chain positions (restart at 0 inside each chain; chain == -1 -> 0).
    # Pure [N] integer bookkeeping, left in XLA; result feeds scalar prefetch.
    ci = chain_index.reshape(B, S)
    eq = ci[:, :, None] == ci[:, None, :]
    tri = jnp.arange(S)[None, :] < jnp.arange(S)[:, None]
    pos = jnp.sum(eq & tri[None, :, :], axis=-1).astype(jnp.int32)
    pos = jnp.where(ci == -1, 0, pos)
    return pos.reshape(N)


@jax.jit
def sequence_model_forward(slab32, slab128, x, chain_index):
    pos = _positions_from_chain_index(chain_index)
    padded = fused_forward_pallas(pos, x, slab32, slab128)    # [N, 128] lane-dense
    return padded[:, :C]                                      # [N, C] softmax probs


# ---------------------------- parameter packing --------------------------------
def pack_params(params):
    p = {k: np.asarray(v) for k, v in params.items()}
    s32 = np.zeros((S32_ROWS, H), np.float32)
    s128 = np.zeros((S128_ROWS, OUT_LANES), np.float32)

    s32[R32_PE:R32_PE + PE_LEN] = p["pe"]
    s32[R32_EMB_W:R32_EMB_W + F_IN] = p["emb_w"]
    for l in range(L):
        b32 = R32_LAYER + l * PER32
        b128 = l * PER128
        in_w = p["in_w"][l]                                   # [H, 3H]
        in_b = p["in_b"][l, 0]                                # [3H]
        s32[b32 + O32_QW:b32 + O32_QW + H] = in_w[:, 0:H] * SCALE   # fold 1/sqrt(hd)
        s32[b32 + O32_KW:b32 + O32_KW + H] = in_w[:, H:2 * H]
        s32[b32 + O32_VW:b32 + O32_VW + H] = in_w[:, 2 * H:3 * H]
        s32[b32 + O32_OW:b32 + O32_OW + H] = p["out_w"][l]
        s32[b32 + O32_F2W:b32 + O32_F2W + FF] = p["ff2_w"][l]

        s128[b128 + O128_F1W:b128 + O128_F1W + H, :FF] = p["ff1_w"][l]
        s128[b128 + O128_F1B, :FF] = p["ff1_b"][l, 0]
        s128[b128 + O128_QB, :H] = in_b[0:H] * SCALE
        s128[b128 + O128_KB, :H] = in_b[H:2 * H]
        s128[b128 + O128_VB, :H] = in_b[2 * H:3 * H]
        s128[b128 + O128_OB, :H] = p["out_b"][l, 0]
        s128[b128 + O128_F2B, :H] = p["ff2_b"][l, 0]
        s128[b128 + O128_L1G, :H] = p["ln1_g"][l, 0]
        s128[b128 + O128_L1B, :H] = p["ln1_b"][l, 0]
        s128[b128 + O128_L2G, :H] = p["ln2_g"][l, 0]
        s128[b128 + O128_L2B, :H] = p["ln2_b"][l, 0]

    s128[R128_EMB_B, :H] = p["emb_b"][0]
    bn_scale = p["bn_g"][0] / np.sqrt(p["bn_var"][0] + EPS_BN)   # fold eval BN
    s128[R128_BN_S, :H] = bn_scale
    s128[R128_BN_B, :H] = p["bn_b"][0] - p["bn_mean"][0] * bn_scale
    s128[R128_FIN_B, :] = NEG                                    # pad lanes masked out
    s128[R128_FIN_B, :C] = p["fin_b"][0]
    s128[R128_FIN_W:R128_FIN_W + H, :C] = p["fin_w"]

    # Attention constants: head/graph selection masks + replication matrices.
    h_idx = np.arange(H)
    c_idx = np.arange(SW)
    n_idx = np.arange(N)
    r_idx = np.arange(SW)
    key_node = c_idx % N
    s128[R128_KSEL:R128_KSEL + H] = \
        (h_idx[:, None] // HD == c_idx[None, :] // N).astype(np.float32)
    s128[R128_MASK:R128_MASK + N] = np.where(
        (n_idx[:, None] // S) == (key_node[None, :] // S), 0.0, NEG).astype(np.float32)
    s128[R128_REPK:R128_REPK + N] = \
        (n_idx[:, None] == key_node[None, :]).astype(np.float32)
    s128[R128_SEG:R128_SEG + SW] = \
        (r_idx[:, None] // N == c_idx[None, :] // N).astype(np.float32)
    s32[R32_VSEL:R32_VSEL + SW] = \
        (r_idx[:, None] // N == h_idx[None, :] // HD).astype(np.float32)
    s32[R32_REPV:R32_REPV + SW, :N] = \
        (r_idx[:, None] % N == n_idx[None, :]).astype(np.float32)

    return jnp.asarray(s32), jnp.asarray(s128)


# ---------------------------- pure-JAX reference ------------------------------
def reference_forward(params, x, chain_index):
    hp = jax.lax.Precision.HIGHEST
    pos = _positions_from_chain_index(chain_index)
    pe_slab = params["pe"][pos]

    def ln(x_, g, b):
        mu = jnp.mean(x_, axis=-1, keepdims=True)
        xc = x_ - mu
        var = jnp.mean(xc * xc, axis=-1, keepdims=True)
        return xc / jnp.sqrt(var + EPS_LN) * g + b

    h = jnp.dot(x, params["emb_w"], precision=hp) + params["emb_b"][0] + pe_slab
    for l in range(L):
        qkv = jnp.dot(h, params["in_w"][l], precision=hp) + params["in_b"][l, 0]
        q, k, v = qkv[:, :H], qkv[:, H:2 * H], qkv[:, 2 * H:]
        qh = q.reshape(B, S, NH, HD)
        kh = k.reshape(B, S, NH, HD)
        vh = v.reshape(B, S, NH, HD)
        sc = jnp.einsum("bsnd,btnd->bnst", qh, kh, precision=hp) * SCALE
        pa = jax.nn.softmax(sc, axis=-1)
        attn = jnp.einsum("bnst,btnd->bsnd", pa, vh, precision=hp).reshape(N, H)
        attn_out = jnp.dot(attn, params["out_w"][l], precision=hp) + params["out_b"][l, 0]
        x1 = ln(h + attn_out, params["ln1_g"][l, 0], params["ln1_b"][l, 0])
        ff = jax.nn.relu(jnp.dot(x1, params["ff1_w"][l], precision=hp)
                         + params["ff1_b"][l, 0])
        ff = jnp.dot(ff, params["ff2_w"][l], precision=hp) + params["ff2_b"][l, 0]
        h = ln(x1 + ff, params["ln2_g"][l, 0], params["ln2_b"][l, 0])
    xn = (h - params["bn_mean"][0]) / jnp.sqrt(params["bn_var"][0] + EPS_BN)
    xn = xn * params["bn_g"][0] + params["bn_b"][0]
    logits = jnp.dot(jax.nn.relu(xn), params["fin_w"], precision=hp) + params["fin_b"][0]
    return jax.nn.softmax(logits, axis=1)


# ---------------------------- parameter init ----------------------------------
def _init_linear(key, fan_in, fan_out):
    k1, k2 = jax.random.split(key)
    bound = 1.0 / np.sqrt(fan_in)
    w = jax.random.uniform(k1, (fan_in, fan_out), jnp.float32, -bound, bound)
    b = jax.random.uniform(k2, (1, fan_out), jnp.float32, -bound, bound)
    return w, b


def make_params(key):
    keys = jax.random.split(key, 2 + 6 * L)
    ki = iter(keys)

    emb_w, emb_b = _init_linear(next(ki), F_IN, H)

    in_w, in_b, out_w, out_b = [], [], [], []
    ff1_w, ff1_b, ff2_w, ff2_b = [], [], [], []
    ln1_g, ln1_b, ln2_g, ln2_b = [], [], [], []
    for _ in range(L):
        w, b = _init_linear(next(ki), H, 3 * H); in_w.append(w); in_b.append(b)
        w, b = _init_linear(next(ki), H, H); out_w.append(w); out_b.append(b)
        w, b = _init_linear(next(ki), H, 4 * H); ff1_w.append(w); ff1_b.append(b)
        w, b = _init_linear(next(ki), 4 * H, H); ff2_w.append(w); ff2_b.append(b)
        g1 = 1.0 + 0.01 * jax.random.normal(next(ki), (1, H), jnp.float32)
        g2 = 1.0 + 0.01 * jax.random.normal(next(ki), (1, H), jnp.float32)
        ln1_g.append(g1); ln1_b.append(jnp.zeros((1, H), jnp.float32))
        ln2_g.append(g2); ln2_b.append(jnp.zeros((1, H), jnp.float32))

    fin_w, fin_b = _init_linear(next(ki), H, C)

    # Sinusoidal positional-encoding table.
    position = np.arange(PE_LEN, dtype=np.float32)[:, None]
    div_term = np.exp(np.arange(0, H, 2, dtype=np.float32) * (-np.log(10000.0) / H))
    pe = np.zeros((PE_LEN, H), dtype=np.float32)
    pe[:, 0::2] = np.sin(position * div_term)
    pe[:, 1::2] = np.cos(position * div_term)

    stk = lambda xs: jnp.stack(xs, axis=0)
    return dict(
        emb_w=emb_w, emb_b=emb_b,
        in_w=stk(in_w), in_b=stk(in_b),
        out_w=stk(out_w), out_b=stk(out_b),
        ff1_w=stk(ff1_w), ff1_b=stk(ff1_b),
        ff2_w=stk(ff2_w), ff2_b=stk(ff2_b),
        ln1_g=stk(ln1_g), ln1_b=stk(ln1_b),
        ln2_g=stk(ln2_g), ln2_b=stk(ln2_b),
        bn_g=jnp.ones((1, H), jnp.float32), bn_b=jnp.zeros((1, H), jnp.float32),
        bn_mean=jnp.zeros((1, H), jnp.float32), bn_var=jnp.ones((1, H), jnp.float32),
        fin_w=fin_w, fin_b=fin_b,
        pe=jnp.asarray(pe),
    )


# ---------------------------------- main ---------------------------------------
if __name__ == "__main__":
    root = jax.random.PRNGKey(0)
    kp, kx = jax.random.split(root)

    params = make_params(kp)
    slab32, slab128 = pack_params(params)

    # Synthetic graph batch: B graphs of S nodes each, stored contiguously,
    # each graph containing two chains of 4 nodes.
    x = jax.random.normal(kx, (N, F_IN), jnp.float32)
    chain_index = jnp.tile(jnp.array([0, 0, 0, 0, 1, 1, 1, 1], jnp.int32), B)  # [N]

    out = sequence_model_forward(slab32, slab128, x, chain_index)   # [N, C]
    out = jax.block_until_ready(out)

    ref = reference_forward(params, x, chain_index)

    assert out.shape == (N, C)
    assert bool(jnp.all(jnp.isfinite(out)))
    assert bool(jnp.allclose(jnp.sum(out, axis=1), 1.0, atol=1e-4))
    max_err = float(jnp.max(jnp.abs(out - ref)))
    assert max_err < 5e-3, max_err
    print("KERNEL_OK")
</pallas_src>

<mosaic_0001>
module attributes {stable_mosaic.version = 11 : i64} {
  func.func @_fused_forward_kernel(%arg0: i32, %arg1: memref<16xi32, #tpu.memory_space<smem>>, %arg2: memref<16x16xf32, #tpu.memory_space<vmem>>, %arg3: memref<1296x32xf32, #tpu.memory_space<vmem>>, %arg4: memref<328x128xf32, #tpu.memory_space<vmem>>, %arg5: memref<16x128xf32, #tpu.memory_space<vmem>>, %arg6: memref<16x32xf32, #tpu.memory_space<vmem>>) attributes {dimension_semantics = [#tpu.dimension_semantics<arbitrary>], iteration_bounds = array<i64: 1>, scalar_prefetch = 1 : i64, scratch_operands = 1 : i64, tpu.core_type = #tpu.core_type<tc>, window_params = [{pipeline_mode = #tpu.pipeline_mode<synchronous>, transform_indices = @transform_0, window_bounds = array<i64: 16, 16>}, {pipeline_mode = #tpu.pipeline_mode<synchronous>, transform_indices = @transform_1, window_bounds = array<i64: 1296, 32>}, {pipeline_mode = #tpu.pipeline_mode<synchronous>, transform_indices = @transform_2, window_bounds = array<i64: 328, 128>}, {pipeline_mode = #tpu.pipeline_mode<synchronous>, transform_indices = @transform_3, window_bounds = array<i64: 16, 128>}]} {
    %c0 = arith.constant 0 : index
    %0 = memref.load %arg1[%c0] : memref<16xi32, #tpu.memory_space<smem>>
    %1 = arith.index_cast %0 : i32 to index
    %c0_0 = arith.constant 0 : index
    %2 = vector.load %arg3[%1, %c0_0] : memref<1296x32xf32, #tpu.memory_space<vmem>>, vector<1x32xf32>
    %c0_1 = arith.constant 0 : index
    %c0_2 = arith.constant 0 : index
    %3 = vector.load %arg6[%c0_1, %c0_2] : memref<16x32xf32, #tpu.memory_space<vmem>>, vector<1x32xf32>
    tpu.vector_store %arg6[%c0_1, %c0_2], %2 {strides = array<i32>} : memref<16x32xf32, #tpu.memory_space<vmem>>, vector<1x32xf32>,
    %c1 = arith.constant 1 : index
    %4 = memref.load %arg1[%c1] : memref<16xi32, #tpu.memory_space<smem>>
    %5 = arith.index_cast %4 : i32 to index
    %c0_3 = arith.constant 0 : index
    %6 = vector.load %arg3[%5, %c0_3] : memref<1296x32xf32, #tpu.memory_space<vmem>>, vector<1x32xf32>
    %c1_4 = arith.constant 1 : index
    %c0_5 = arith.constant 0 : index
    %7 = vector.load %arg6[%c1_4, %c0_5] : memref<16x32xf32, #tpu.memory_space<vmem>>, vector<1x32xf32>
    tpu.vector_store %arg6[%c1_4, %c0_5], %6 {strides = array<i32>} : memref<16x32xf32, #tpu.memory_space<vmem>>, vector<1x32xf32>,
    %c2 = arith.constant 2 : index
    %8 = memref.load %arg1[%c2] : memref<16xi32, #tpu.memory_space<smem>>
    %9 = arith.index_cast %8 : i32 to index
    %c0_6 = arith.constant 0 : index
    %10 = vector.load %arg3[%9, %c0_6] : memref<1296x32xf32, #tpu.memory_space<vmem>>, vector<1x32xf32>
    %c2_7 = arith.constant 2 : index
    %c0_8 = arith.constant 0 : index
    %11 = vector.load %arg6[%c2_7, %c0_8] : memref<16x32xf32, #tpu.memory_space<vmem>>, vector<1x32xf32>
    tpu.vector_store %arg6[%c2_7, %c0_8], %10 {strides = array<i32>} : memref<16x32xf32, #tpu.memory_space<vmem>>, vector<1x32xf32>,
    %c3 = arith.constant 3 : index
    %12 = memref.load %arg1[%c3] : memref<16xi32, #tpu.memory_space<smem>>
    %13 = arith.index_cast %12 : i32 to index
    %c0_9 = arith.constant 0 : index
    %14 = vector.load %arg3[%13, %c0_9] : memref<1296x32xf32, #tpu.memory_space<vmem>>, vector<1x32xf32>
    %c3_10 = arith.constant 3 : index
    %c0_11 = arith.constant 0 : index
    %15 = vector.load %arg6[%c3_10, %c0_11] : memref<16x32xf32, #tpu.memory_space<vmem>>, vector<1x32xf32>
    tpu.vector_store %arg6[%c3_10, %c0_11], %14 {strides = array<i32>} : memref<16x32xf32, #tpu.memory_space<vmem>>, vector<1x32xf32>,
    %c4 = arith.constant 4 : index
    %16 = memref.load %arg1[%c4] : memref<16xi32, #tpu.memory_space<smem>>
    %17 = arith.index_cast %16 : i32 to index
    %c0_12 = arith.constant 0 : index
    %18 = vector.load %arg3[%17, %c0_12] : memref<1296x32xf32, #tpu.memory_space<vmem>>, vector<1x32xf32>
    %c4_13 = arith.constant 4 : index
    %c0_14 = arith.constant 0 : index
    %19 = vector.load %arg6[%c4_13, %c0_14] : memref<16x32xf32, #tpu.memory_space<vmem>>, vector<1x32xf32>
    tpu.vector_store %arg6[%c4_13, %c0_14], %18 {strides = array<i32>} : memref<16x32xf32, #tpu.memory_space<vmem>>, vector<1x32xf32>,
    %c5 = arith.constant 5 : index
    %20 = memref.load %arg1[%c5] : memref<16xi32, #tpu.memory_space<smem>>
    %21 = arith.index_cast %20 : i32 to index
    %c0_15 = arith.constant 0 : index
    %22 = vector.load %arg3[%21, %c0_15] : memref<1296x32xf32, #tpu.memory_space<vmem>>, vector<1x32xf32>
    %c5_16 = arith.constant 5 : index
    %c0_17 = arith.constant 0 : index
    %23 = vector.load %arg6[%c5_16, %c0_17] : memref<16x32xf32, #tpu.memory_space<vmem>>, vector<1x32xf32>
    tpu.vector_store %arg6[%c5_16, %c0_17], %22 {strides = array<i32>} : memref<16x32xf32, #tpu.memory_space<vmem>>, vector<1x32xf32>,
    %c6 = arith.constant 6 : index
    %24 = memref.load %arg1[%c6] : memref<16xi32, #tpu.memory_space<smem>>
    %25 = arith.index_cast %24 : i32 to index
    %c0_18 = arith.constant 0 : index
    %26 = vector.load %arg3[%25, %c0_18] : memref<1296x32xf32, #tpu.memory_space<vmem>>, vector<1x32xf32>
    %c6_19 = arith.constant 6 : index
    %c0_20 = arith.constant 0 : index
    %27 = vector.load %arg6[%c6_19, %c0_20] : memref<16x32xf32, #tpu.memory_space<vmem>>, vector<1x32xf32>
    tpu.vector_store %arg6[%c6_19, %c0_20], %26 {strides = array<i32>} : memref<16x32xf32, #tpu.memory_space<vmem>>, vector<1x32xf32>,
    %c7 = arith.constant 7 : index
    %28 = memref.load %arg1[%c7] : memref<16xi32, #tpu.memory_space<smem>>
    %29 = arith.index_cast %28 : i32 to index
    %c0_21 = arith.constant 0 : index
    %30 = vector.load %arg3[%29, %c0_21] : memref<1296x32xf32, #tpu.memory_space<vmem>>, vector<1x32xf32>
    %c7_22 = arith.constant 7 : index
    %c0_23 = arith.constant 0 : index
    %31 = vector.load %arg6[%c7_22, %c0_23] : memref<16x32xf32, #tpu.memory_space<vmem>>, vector<1x32xf32>
    tpu.vector_store %arg6[%c7_22, %c0_23], %30 {strides = array<i32>} : memref<16x32xf32, #tpu.memory_space<vmem>>, vector<1x32xf32>,
    %c8 = arith.constant 8 : index
    %32 = memref.load %arg1[%c8] : memref<16xi32, #tpu.memory_space<smem>>
    %33 = arith.index_cast %32 : i32 to index
    %c0_24 = arith.constant 0 : index
    %34 = vector.load %arg3[%33, %c0_24] : memref<1296x32xf32, #tpu.memory_space<vmem>>, vector<1x32xf32>
    %c8_25 = arith.constant 8 : index
    %c0_26 = arith.constant 0 : index
    %35 = vector.load %arg6[%c8_25, %c0_26] : memref<16x32xf32, #tpu.memory_space<vmem>>, vector<1x32xf32>
    tpu.vector_store %arg6[%c8_25, %c0_26], %34 {strides = array<i32>} : memref<16x32xf32, #tpu.memory_space<vmem>>, vector<1x32xf32>,
    %c9 = arith.constant 9 : index
    %36 = memref.load %arg1[%c9] : memref<16xi32, #tpu.memory_space<smem>>
    %37 = arith.index_cast %36 : i32 to index
    %c0_27 = arith.constant 0 : index
    %38 = vector.load %arg3[%37, %c0_27] : memref<1296x32xf32, #tpu.memory_space<vmem>>, vector<1x32xf32>
    %c9_28 = arith.constant 9 : index
    %c0_29 = arith.constant 0 : index
    %39 = vector.load %arg6[%c9_28, %c0_29] : memref<16x32xf32, #tpu.memory_space<vmem>>, vector<1x32xf32>
    tpu.vector_store %arg6[%c9_28, %c0_29], %38 {strides = array<i32>} : memref<16x32xf32, #tpu.memory_space<vmem>>, vector<1x32xf32>,
    %c10 = arith.constant 10 : index
    %40 = memref.load %arg1[%c10] : memref<16xi32, #tpu.memory_space<smem>>
    %41 = arith.index_cast %40 : i32 to index
    %c0_30 = arith.constant 0 : index
    %42 = vector.load %arg3[%41, %c0_30] : memref<1296x32xf32, #tpu.memory_space<vmem>>, vector<1x32xf32>
    %c10_31 = arith.constant 10 : index
    %c0_32 = arith.constant 0 : index
    %43 = vector.load %arg6[%c10_31, %c0_32] : memref<16x32xf32, #tpu.memory_space<vmem>>, vector<1x32xf32>
    tpu.vector_store %arg6[%c10_31, %c0_32], %42 {strides = array<i32>} : memref<16x32xf32, #tpu.memory_space<vmem>>, vector<1x32xf32>,
    %c11 = arith.constant 11 : index
    %44 = memref.load %arg1[%c11] : memref<16xi32, #tpu.memory_space<smem>>
    %45 = arith.index_cast %44 : i32 to index
    %c0_33 = arith.constant 0 : index
    %46 = vector.load %arg3[%45, %c0_33] : memref<1296x32xf32, #tpu.memory_space<vmem>>, vector<1x32xf32>
    %c11_34 = arith.constant 11 : index
    %c0_35 = arith.constant 0 : index
    %47 = vector.load %arg6[%c11_34, %c0_35] : memref<16x32xf32, #tpu.memory_space<vmem>>, vector<1x32xf32>
    tpu.vector_store %arg6[%c11_34, %c0_35], %46 {strides = array<i32>} : memref<16x32xf32, #tpu.memory_space<vmem>>, vector<1x32xf32>,
    %c12 = arith.constant 12 : index
    %48 = memref.load %arg1[%c12] : memref<16xi32, #tpu.memory_space<smem>>
    %49 = arith.index_cast %48 : i32 to index
    %c0_36 = arith.constant 0 : index
    %50 = vector.load %arg3[%49, %c0_36] : memref<1296x32xf32, #tpu.memory_space<vmem>>, vector<1x32xf32>
    %c12_37 = arith.constant 12 : index
    %c0_38 = arith.constant 0 : index
    %51 = vector.load %arg6[%c12_37, %c0_38] : memref<16x32xf32, #tpu.memory_space<vmem>>, vector<1x32xf32>
    tpu.vector_store %arg6[%c12_37, %c0_38], %50 {strides = array<i32>} : memref<16x32xf32, #tpu.memory_space<vmem>>, vector<1x32xf32>,
    %c13 = arith.constant 13 : index
    %52 = memref.load %arg1[%c13] : memref<16xi32, #tpu.memory_space<smem>>
    %53 = arith.index_cast %52 : i32 to index
    %c0_39 = arith.constant 0 : index
    %54 = vector.load %arg3[%53, %c0_39] : memref<1296x32xf32, #tpu.memory_space<vmem>>, vector<1x32xf32>
    %c13_40 = arith.constant 13 : index
    %c0_41 = arith.constant 0 : index
    %55 = vector.load %arg6[%c13_40, %c0_41] : memref<16x32xf32, #tpu.memory_space<vmem>>, vector<1x32xf32>
    tpu.vector_store %arg6[%c13_40, %c0_41], %54 {strides = array<i32>} : memref<16x32xf32, #tpu.memory_space<vmem>>, vector<1x32xf32>,
    %c14 = arith.constant 14 : index
    %56 = memref.load %arg1[%c14] : memref<16xi32, #tpu.memory_space<smem>>
    %57 = arith.index_cast %56 : i32 to index
    %c0_42 = arith.constant 0 : index
    %58 = vector.load %arg3[%57, %c0_42] : memref<1296x32xf32, #tpu.memory_space<vmem>>, vector<1x32xf32>
    %c14_43 = arith.constant 14 : index
    %c0_44 = arith.constant 0 : index
    %59 = vector.load %arg6[%c14_43, %c0_44] : memref<16x32xf32, #tpu.memory_space<vmem>>, vector<1x32xf32>
    tpu.vector_store %arg6[%c14_43, %c0_44], %58 {strides = array<i32>} : memref<16x32xf32, #tpu.memory_space<vmem>>, vector<1x32xf32>,
    %c15 = arith.constant 15 : index
    %60 = memref.load %arg1[%c15] : memref<16xi32, #tpu.memory_space<smem>>
    %61 = arith.index_cast %60 : i32 to index
    %c0_45 = arith.constant 0 : index
    %62 = vector.load %arg3[%61, %c0_45] : memref<1296x32xf32, #tpu.memory_space<vmem>>, vector<1x32xf32>
    %c15_46 = arith.constant 15 : index
    %c0_47 = arith.constant 0 : index
    %63 = vector.load %arg6[%c15_46, %c0_47] : memref<16x32xf32, #tpu.memory_space<vmem>>, vector<1x32xf32>
    tpu.vector_store %arg6[%c15_46, %c0_47], %62 {strides = array<i32>} : memref<16x32xf32, #tpu.memory_space<vmem>>, vector<1x32xf32>,
    %c0_48 = arith.constant 0 : index
    %c0_49 = arith.constant 0 : index
    %64 = vector.load %arg2[%c0_48, %c0_49] : memref<16x16xf32, #tpu.memory_space<vmem>>, vector<16x16xf32>
    %c512 = arith.constant 512 : index
    %c0_50 = arith.constant 0 : index
    %65 = vector.load %arg3[%c512, %c0_50] : memref<1296x32xf32, #tpu.memory_space<vmem>>, vector<16x32xf32>
    %cst = arith.constant dense<0.000000e+00> : vector<16x32xf32>
    %66 = tpu.matmul %64, %65, %cst {dimension_numbers = #tpu.dot_dimension_numbers<[1], [0], [0], [1], [0, 0, 1, 1], [], []>} : vector<16x16xf32>, vector<16x32xf32>, vector<16x32xf32> -> vector<16x32xf32>
    %c96 = arith.constant 96 : index
    %c0_51 = arith.constant 0 : index
    %67 = vector.load %arg4[%c96, %c0_51] : memref<328x128xf32, #tpu.memory_space<vmem>>, vector<1x32xf32>
    %68 = vector.broadcast %67 : vector<1x32xf32> to vector<16x32xf32>
    %69 = arith.addf %66, %68 : vector<16x32xf32>
    %c0_52 = arith.constant 0 : index
    %c0_53 = arith.constant 0 : index
    %70 = vector.load %arg6[%c0_52, %c0_53] : memref<16x32xf32, #tpu.memory_space<vmem>>, vector<16x32xf32>
    %71 = arith.addf %69, %70 : vector<16x32xf32>
    %c528 = arith.constant 528 : index
    %c0_54 = arith.constant 0 : index
    %72 = vector.load %arg3[%c528, %c0_54] : memref<1296x32xf32, #tpu.memory_space<vmem>>, vector<32x32xf32>
    %cst_55 = arith.constant dense<0.000000e+00> : vector<16x32xf32>
    %73 = tpu.matmul %71, %72, %cst_55 {dimension_numbers = #tpu.dot_dimension_numbers<[1], [0], [0], [1], [0, 0, 1, 1], [], []>} : vector<16x32xf32>, vector<32x32xf32>, vector<16x32xf32> -> vector<16x32xf32>
    %c33 = arith.constant 33 : index
    %c0_56 = arith.constant 0 : index
    %74 = vector.load %arg4[%c33, %c0_56] : memref<328x128xf32, #tpu.memory_space<vmem>>, vector<1x32xf32>
    %75 = vector.broadcast %74 : vector<1x32xf32> to vector<16x32xf32>
    %76 = arith.addf %73, %75 : vector<16x32xf32>
    %c560 = arith.constant 560 : index
    %c0_57 = arith.constant 0 : index
    %77 = vector.load %arg3[%c560, %c0_57] : memref<1296x32xf32, #tpu.memory_space<vmem>>, vector<32x32xf32>
    %cst_58 = arith.constant dense<0.000000e+00> : vector<16x32xf32>
    %78 = tpu.matmul %71, %77, %cst_58 {dimension_numbers = #tpu.dot_dimension_numbers<[1], [0], [0], [1], [0, 0, 1, 1], [], []>} : vector<16x32xf32>, vector<32x32xf32>, vector<16x32xf32> -> vector<16x32xf32>
    %c34 = arith.constant 34 : index
    %c0_59 = arith.constant 0 : index
    %79 = vector.load %arg4[%c34, %c0_59] : memref<328x128xf32, #tpu.memory_space<vmem>>, vector<1x32xf32>
    %80 = vector.broadcast %79 : vector<1x32xf32> to vector<16x32xf32>
    %81 = arith.addf %78, %80 : vector<16x32xf32>
    %c592 = arith.constant 592 : index
    %c0_60 = arith.constant 0 : index
    %82 = vector.load %arg3[%c592, %c0_60] : memref<1296x32xf32, #tpu.memory_space<vmem>>, vector<32x32xf32>
    %cst_61 = arith.constant dense<0.000000e+00> : vector<16x32xf32>
    %83 = tpu.matmul %71, %82, %cst_61 {dimension_numbers = #tpu.dot_dimension_numbers<[1], [0], [0], [1], [0, 0, 1, 1], [], []>} : vector<16x32xf32>, vector<32x32xf32>, vector<16x32xf32> -> vector<16x32xf32>
    %c35 = arith.constant 35 : index
    %c0_62 = arith.constant 0 : index
    %84 = vector.load %arg4[%c35, %c0_62] : memref<328x128xf32, #tpu.memory_space<vmem>>, vector<1x32xf32>
    %85 = vector.broadcast %84 : vector<1x32xf32> to vector<16x32xf32>
    %86 = arith.addf %83, %85 : vector<16x32xf32>
    %c136 = arith.constant 136 : index
    %c0_63 = arith.constant 0 : index
    %87 = vector.load %arg4[%c136, %c0_63] : memref<328x128xf32, #tpu.memory_space<vmem>>, vector<32x128xf32>
    %c168 = arith.constant 168 : index
    %c0_64 = arith.constant 0 : index
    %88 = vector.load %arg4[%c168, %c0_64] : memref<328x128xf32, #tpu.memory_space<vmem>>, vector<16x128xf32>
    %c184 = arith.constant 184 : index
    %c0_65 = arith.constant 0 : index
    %89 = vector.load %arg4[%c184, %c0_65] : memref<328x128xf32, #tpu.memory_space<vmem>>, vector<16x128xf32>
    %c200 = arith.constant 200 : index
    %c0_66 = arith.constant 0 : index
    %90 = vector.load %arg4[%c200, %c0_66] : memref<328x128xf32, #tpu.memory_space<vmem>>, vector<128x128xf32>
    %c1040 = arith.constant 1040 : index
    %c0_67 = arith.constant 0 : index
    %91 = vector.load %arg3[%c1040, %c0_67] : memref<1296x32xf32, #tpu.memory_space<vmem>>, vector<128x32xf32>
    %c1168 = arith.constant 1168 : index
    %c0_68 = arith.constant 0 : index
    %92 = vector.load %arg3[%c1168, %c0_68] : memref<1296x32xf32, #tpu.memory_space<vmem>>, vector<128x16xf32>
    %93 = tpu.transpose %81, [1, 0] : vector<16x32xf32> -> vector<32x16xf32>
    %cst_69 = arith.constant dense<0.000000e+00> : vector<32x128xf32>
    %94 = tpu.matmul %93, %89, %cst_69 {dimension_numbers = #tpu.dot_dimension_numbers<[1], [0], [0], [1], [0, 0, 1, 1], [], []>} : vector<32x16xf32>, vector<16x128xf32>, vector<32x128xf32> -> vector<32x128xf32>
    %95 = arith.mulf %94, %87 : vector<32x128xf32>
    %cst_70 = arith.constant dense<0.000000e+00> : vector<16x128xf32>
    %96 = tpu.matmul %76, %95, %cst_70 {dimension_numbers = #tpu.dot_dimension_numbers<[1], [0], [0], [1], [0, 0, 1, 1], [], []>} : vector<16x32xf32>, vector<32x128xf32>, vector<16x128xf32> -> vector<16x128xf32>
    %97 = arith.addf %96, %88 : vector<16x128xf32>
    %cst_71 = arith.constant dense<0xFF800000> : vector<16xf32>
    %98 = vector.multi_reduction <maximumf>, %97, %cst_71 [1] : vector<16x128xf32> to vector<16xf32>
    %99 = vector.shape_cast %98 : vector<16xf32> to vector<16x1xf32>
    %100 = vector.broadcast %99 : vector<16x1xf32> to vector<16x128xf32>
    %101 = arith.subf %97, %100 : vector<16x128xf32>
    %102 = math.exp %101 : vector<16x128xf32>
    %cst_72 = arith.constant dense<0.000000e+00> : vector<16x128xf32>
    %103 = tpu.matmul %102, %90, %cst_72 {dimension_numbers = #tpu.dot_dimension_numbers<[1], [0], [0], [1], [0, 0, 1, 1], [], []>} : vector<16x128xf32>, vector<128x128xf32>, vector<16x128xf32> -> vector<16x128xf32>
    %cst_73 = arith.constant 1.000000e-30 : f32
    %104 = vector.broadcast %cst_73 : f32 to vector<16x128xf32>
    %105 = arith.maximumf %103, %104 : vector<16x128xf32>
    %106 = tpu.reciprocal %105 {approx = true} : vector<16x128xf32> -> vector<16x128xf32>
    %107 = arith.mulf %105, %106 : vector<16x128xf32>
    %cst_74 = arith.constant 2.000000e+00 : f32
    %108 = vector.broadcast %cst_74 : f32 to vector<16x128xf32>
    %109 = arith.subf %108, %107 : vector<16x128xf32>
    %110 = arith.mulf %106, %109 : vector<16x128xf32>
    %111 = arith.mulf %102, %110 : vector<16x128xf32>
    %cst_75 = arith.constant dense<0.000000e+00> : vector<128x32xf32>
    %112 = tpu.matmul %92, %86, %cst_75 {dimension_numbers = #tpu.dot_dimension_numbers<[1], [0], [0], [1], [0, 0, 1, 1], [], []>} : vector<128x16xf32>, vector<16x32xf32>, vector<128x32xf32> -> vector<128x32xf32>
    %113 = arith.mulf %112, %91 : vector<128x32xf32>
    %cst_76 = arith.constant dense<0.000000e+00> : vector<16x32xf32>
    %114 = tpu.matmul %111, %113, %cst_76 {dimension_numbers = #tpu.dot_dimension_numbers<[1], [0], [0], [1], [0, 0, 1, 1], [], []>} : vector<16x128xf32>, vector<128x32xf32>, vector<16x32xf32> -> vector<16x32xf32>
    %c624 = arith.constant 624 : index
    %c0_77 = arith.constant 0 : index
    %115 = vector.load %arg3[%c624, %c0_77] : memref<1296x32xf32, #tpu.memory_space<vmem>>, vector<32x32xf32>
    %cst_78 = arith.constant dense<0.000000e+00> : vector<16x32xf32>
    %116 = tpu.matmul %114, %115, %cst_78 {dimension_numbers = #tpu.dot_dimension_numbers<[1], [0], [0], [1], [0, 0, 1, 1], [], []>} : vector<16x32xf32>, vector<32x32xf32>, vector<16x32xf32> -> vector<16x32xf32>
    %c36 = arith.constant 36 : index
    %c0_79 = arith.constant 0 : index
    %117 = vector.load %arg4[%c36, %c0_79] : memref<328x128xf32, #tpu.memory_space<vmem>>, vector<1x32xf32>
    %118 = vector.broadcast %117 : vector<1x32xf32> to vector<16x32xf32>
    %119 = arith.addf %116, %118 : vector<16x32xf32>
    %120 = arith.addf %71, %119 : vector<16x32xf32>
    %c38 = arith.constant 38 : index
    %c0_80 = arith.constant 0 : index
    %121 = vector.load %arg4[%c38, %c0_80] : memref<328x128xf32, #tpu.memory_space<vmem>>, vector<1x32xf32>
    %c39 = arith.constant 39 : index
    %c0_81 = arith.constant 0 : index
    %122 = vector.load %arg4[%c39, %c0_81] : memref<328x128xf32, #tpu.memory_space<vmem>>, vector<1x32xf32>
    %cst_82 = arith.constant dense<0.000000e+00> : vector<16xf32>
    %123 = vector.multi_reduction <add>, %120, %cst_82 [1] : vector<16x32xf32> to vector<16xf32>
    %124 = vector.shape_cast %123 : vector<16xf32> to vector<16x1xf32>
    %cst_83 = arith.constant 3.200000e+01 : f32
    %125 = vector.broadcast %cst_83 : f32 to vector<16x1xf32>
    %126 = arith.divf %124, %125 : vector<16x1xf32>
    %127 = vector.broadcast %126 : vector<16x1xf32> to vector<16x32xf32>
    %128 = arith.subf %120, %127 : vector<16x32xf32>
    %129 = arith.mulf %128, %128 : vector<16x32xf32>
    %cst_84 = arith.constant dense<0.000000e+00> : vector<16xf32>
    %130 = vector.multi_reduction <add>, %129, %cst_84 [1] : vector<16x32xf32> to vector<16xf32>
    %131 = vector.shape_cast %130 : vector<16xf32> to vector<16x1xf32>
    %cst_85 = arith.constant 3.200000e+01 : f32
    %132 = vector.broadcast %cst_85 : f32 to vector<16x1xf32>
    %133 = arith.divf %131, %132 : vector<16x1xf32>
    %cst_86 = arith.constant 9.99999974E-6 : f32
    %134 = vector.broadcast %cst_86 : f32 to vector<16x1xf32>
    %135 = arith.addf %133, %134 : vector<16x1xf32>
    %136 = math.rsqrt %135 : vector<16x1xf32>
    %137 = vector.broadcast %136 : vector<16x1xf32> to vector<16x32xf32>
    %138 = arith.mulf %128, %137 : vector<16x32xf32>
    %139 = vector.broadcast %121 : vector<1x32xf32> to vector<16x32xf32>
    %140 = arith.mulf %138, %139 : vector<16x32xf32>
    %141 = vector.broadcast %122 : vector<1x32xf32> to vector<16x32xf32>
    %142 = arith.addf %140, %141 : vector<16x32xf32>
    %c0_87 = arith.constant 0 : index
    %c0_88 = arith.constant 0 : index
    %143 = vector.load %arg4[%c0_87, %c0_88] : memref<328x128xf32, #tpu.memory_space<vmem>>, vector<32x128xf32>
    %cst_89 = arith.constant dense<0.000000e+00> : vector<16x128xf32>
    %144 = tpu.matmul %142, %143, %cst_89 {dimension_numbers = #tpu.dot_dimension_numbers<[1], [0], [0], [1], [0, 0, 1, 1], [], []>} : vector<16x32xf32>, vector<32x128xf32>, vector<16x128xf32> -> vector<16x128xf32>
    %c32 = arith.constant 32 : index
    %c0_90 = arith.constant 0 : index
    %145 = vector.load %arg4[%c32, %c0_90] : memref<328x128xf32, #tpu.memory_space<vmem>>, vector<1x128xf32>
    %146 = vector.broadcast %145 : vector<1x128xf32> to vector<16x128xf32>
    %147 = arith.addf %144, %146 : vector<16x128xf32>
    %cst_91 = arith.constant 0.000000e+00 : f32
    %148 = vector.broadcast %cst_91 : f32 to vector<16x128xf32>
    %149 = arith.maximumf %147, %148 : vector<16x128xf32>
    %c656 = arith.constant 656 : index
    %c0_92 = arith.constant 0 : index
    %150 = vector.load %arg3[%c656, %c0_92] : memref<1296x32xf32, #tpu.memory_space<vmem>>, vector<128x32xf32>
    %cst_93 = arith.constant dense<0.000000e+00> : vector<16x32xf32>
    %151 = tpu.matmul %149, %150, %cst_93 {dimension_numbers = #tpu.dot_dimension_numbers<[1], [0], [0], [1], [0, 0, 1, 1], [], []>} : vector<16x128xf32>, vector<128x32xf32>, vector<16x32xf32> -> vector<16x32xf32>
    %c37 = arith.constant 37 : index
    %c0_94 = arith.constant 0 : index
    %152 = vector.load %arg4[%c37, %c0_94] : memref<328x128xf32, #tpu.memory_space<vmem>>, vector<1x32xf32>
    %153 = vector.broadcast %152 : vector<1x32xf32> to vector<16x32xf32>
    %154 = arith.addf %151, %153 : vector<16x32xf32>
    %155 = arith.addf %142, %154 : vector<16x32xf32>
    %c40 = arith.constant 40 : index
    %c0_95 = arith.constant 0 : index
    %156 = vector.load %arg4[%c40, %c0_95] : memref<328x128xf32, #tpu.memory_space<vmem>>, vector<1x32xf32>
    %c41 = arith.constant 41 : index
    %c0_96 = arith.constant 0 : index
    %157 = vector.load %arg4[%c41, %c0_96] : memref<328x128xf32, #tpu.memory_space<vmem>>, vector<1x32xf32>
    %cst_97 = arith.constant dense<0.000000e+00> : vector<16xf32>
    %158 = vector.multi_reduction <add>, %155, %cst_97 [1] : vector<16x32xf32> to vector<16xf32>
    %159 = vector.shape_cast %158 : vector<16xf32> to vector<16x1xf32>
    %cst_98 = arith.constant 3.200000e+01 : f32
    %160 = vector.broadcast %cst_98 : f32 to vector<16x1xf32>
    %161 = arith.divf %159, %160 : vector<16x1xf32>
    %162 = vector.broadcast %161 : vector<16x1xf32> to vector<16x32xf32>
    %163 = arith.subf %155, %162 : vector<16x32xf32>
    %164 = arith.mulf %163, %163 : vector<16x32xf32>
    %cst_99 = arith.constant dense<0.000000e+00> : vector<16xf32>
    %165 = vector.multi_reduction <add>, %164, %cst_99 [1] : vector<16x32xf32> to vector<16xf32>
    %166 = vector.shape_cast %165 : vector<16xf32> to vector<16x1xf32>
    %cst_100 = arith.constant 3.200000e+01 : f32
    %167 = vector.broadcast %cst_100 : f32 to vector<16x1xf32>
    %168 = arith.divf %166, %167 : vector<16x1xf32>
    %cst_101 = arith.constant 9.99999974E-6 : f32
    %169 = vector.broadcast %cst_101 : f32 to vector<16x1xf32>
    %170 = arith.addf %168, %169 : vector<16x1xf32>
    %171 = math.rsqrt %170 : vector<16x1xf32>
    %172 = vector.broadcast %171 : vector<16x1xf32> to vector<16x32xf32>
    %173 = arith.mulf %163, %172 : vector<16x32xf32>
    %174 = vector.broadcast %156 : vector<1x32xf32> to vector<16x32xf32>
    %175 = arith.mulf %173, %174 : vector<16x32xf32>
    %176 = vector.broadcast %157 : vector<1x32xf32> to vector<16x32xf32>
    %177 = arith.addf %175, %176 : vector<16x32xf32>
    %c784 = arith.constant 784 : index
    %c0_102 = arith.constant 0 : index
    %178 = vector.load %arg3[%c784, %c0_102] : memref<1296x32xf32, #tpu.memory_space<vmem>>, vector<32x32xf32>
    %cst_103 = arith.constant dense<0.000000e+00> : vector<16x32xf32>
    %179 = tpu.matmul %177, %178, %cst_103 {dimension_numbers = #tpu.dot_dimension_numbers<[1], [0], [0], [1], [0, 0, 1, 1], [], []>} : vector<16x32xf32>, vector<32x32xf32>, vector<16x32xf32> -> vector<16x32xf32>
    %c81 = arith.constant 81 : index
    %c0_104 = arith.constant 0 : index
    %180 = vector.load %arg4[%c81, %c0_104] : memref<328x128xf32, #tpu.memory_space<vmem>>, vector<1x32xf32>
    %181 = vector.broadcast %180 : vector<1x32xf32> to vector<16x32xf32>
    %182 = arith.addf %179, %181 : vector<16x32xf32>
    %c816 = arith.constant 816 : index
    %c0_105 = arith.constant 0 : index
    %183 = vector.load %arg3[%c816, %c0_105] : memref<1296x32xf32, #tpu.memory_space<vmem>>, vector<32x32xf32>
    %cst_106 = arith.constant dense<0.000000e+00> : vector<16x32xf32>
    %184 = tpu.matmul %177, %183, %cst_106 {dimension_numbers = #tpu.dot_dimension_numbers<[1], [0], [0], [1], [0, 0, 1, 1], [], []>} : vector<16x32xf32>, vector<32x32xf32>, vector<16x32xf32> -> vector<16x32xf32>
    %c82 = arith.constant 82 : index
    %c0_107 = arith.constant 0 : index
    %185 = vector.load %arg4[%c82, %c0_107] : memref<328x128xf32, #tpu.memory_space<vmem>>, vector<1x32xf32>
    %186 = vector.broadcast %185 : vector<1x32xf32> to vector<16x32xf32>
    %187 = arith.addf %184, %186 : vector<16x32xf32>
    %c848 = arith.constant 848 : index
    %c0_108 = arith.constant 0 : index
    %188 = vector.load %arg3[%c848, %c0_108] : memref<1296x32xf32, #tpu.memory_space<vmem>>, vector<32x32xf32>
    %cst_109 = arith.constant dense<0.000000e+00> : vector<16x32xf32>
    %189 = tpu.matmul %177, %188, %cst_109 {dimension_numbers = #tpu.dot_dimension_numbers<[1], [0], [0], [1], [0, 0, 1, 1], [], []>} : vector<16x32xf32>, vector<32x32xf32>, vector<16x32xf32> -> vector<16x32xf32>
    %c83 = arith.constant 83 : index
    %c0_110 = arith.constant 0 : index
    %190 = vector.load %arg4[%c83, %c0_110] : memref<328x128xf32, #tpu.memory_space<vmem>>, vector<1x32xf32>
    %191 = vector.broadcast %190 : vector<1x32xf32> to vector<16x32xf32>
    %192 = arith.addf %189, %191 : vector<16x32xf32>
    %c136_111 = arith.constant 136 : index
    %c0_112 = arith.constant 0 : index
    %193 = vector.load %arg4[%c136_111, %c0_112] : memref<328x128xf32, #tpu.memory_space<vmem>>, vector<32x128xf32>
    %c168_113 = arith.constant 168 : index
    %c0_114 = arith.constant 0 : index
    %194 = vector.load %arg4[%c168_113, %c0_114] : memref<328x128xf32, #tpu.memory_space<vmem>>, vector<16x128xf32>
    %c184_115 = arith.constant 184 : index
    %c0_116 = arith.constant 0 : index
    %195 = vector.load %arg4[%c184_115, %c0_116] : memref<328x128xf32, #tpu.memory_space<vmem>>, vector<16x128xf32>
    %c200_117 = arith.constant 200 : index
    %c0_118 = arith.constant 0 : index
    %196 = vector.load %arg4[%c200_117, %c0_118] : memref<328x128xf32, #tpu.memory_space<vmem>>, vector<128x128xf32>
    %c1040_119 = arith.constant 1040 : index
    %c0_120 = arith.constant 0 : index
    %197 = vector.load %arg3[%c1040_119, %c0_120] : memref<1296x32xf32, #tpu.memory_space<vmem>>, vector<128x32xf32>
    %c1168_121 = arith.constant 1168 : index
    %c0_122 = arith.constant 0 : index
    %198 = vector.load %arg3[%c1168_121, %c0_122] : memref<1296x32xf32, #tpu.memory_space<vmem>>, vector<128x16xf32>
    %199 = tpu.transpose %187, [1, 0] : vector<16x32xf32> -> vector<32x16xf32>
    %cst_123 = arith.constant dense<0.000000e+00> : vector<32x128xf32>
    %200 = tpu.matmul %199, %195, %cst_123 {dimension_numbers = #tpu.dot_dimension_numbers<[1], [0], [0], [1], [0, 0, 1, 1], [], []>} : vector<32x16xf32>, vector<16x128xf32>, vector<32x128xf32> -> vector<32x128xf32>
    %201 = arith.mulf %200, %193 : vector<32x128xf32>
    %cst_124 = arith.constant dense<0.000000e+00> : vector<16x128xf32>
    %202 = tpu.matmul %182, %201, %cst_124 {dimension_numbers = #tpu.dot_dimension_numbers<[1], [0], [0], [1], [0, 0, 1, 1], [], []>} : vector<16x32xf32>, vector<32x128xf32>, vector<16x128xf32> -> vector<16x128xf32>
    %203 = arith.addf %202, %194 : vector<16x128xf32>
    %cst_125 = arith.constant dense<0xFF800000> : vector<16xf32>
    %204 = vector.multi_reduction <maximumf>, %203, %cst_125 [1] : vector<16x128xf32> to vector<16xf32>
    %205 = vector.shape_cast %204 : vector<16xf32> to vector<16x1xf32>
    %206 = vector.broadcast %205 : vector<16x1xf32> to vector<16x128xf32>
    %207 = arith.subf %203, %206 : vector<16x128xf32>
    %208 = math.exp %207 : vector<16x128xf32>
    %cst_126 = arith.constant dense<0.000000e+00> : vector<16x128xf32>
    %209 = tpu.matmul %208, %196, %cst_126 {dimension_numbers = #tpu.dot_dimension_numbers<[1], [0], [0], [1], [0, 0, 1, 1], [], []>} : vector<16x128xf32>, vector<128x128xf32>, vector<16x128xf32> -> vector<16x128xf32>
    %cst_127 = arith.constant 1.000000e-30 : f32
    %210 = vector.broadcast %cst_127 : f32 to vector<16x128xf32>
    %211 = arith.maximumf %209, %210 : vector<16x128xf32>
    %212 = tpu.reciprocal %211 {approx = true} : vector<16x128xf32> -> vector<16x128xf32>
    %213 = arith.mulf %211, %212 : vector<16x128xf32>
    %cst_128 = arith.constant 2.000000e+00 : f32
    %214 = vector.broadcast %cst_128 : f32 to vector<16x128xf32>
    %215 = arith.subf %214, %213 : vector<16x128xf32>
    %216 = arith.mulf %212, %215 : vector<16x128xf32>
    %217 = arith.mulf %208, %216 : vector<16x128xf32>
    %cst_129 = arith.constant dense<0.000000e+00> : vector<128x32xf32>
    %218 = tpu.matmul %198, %192, %cst_129 {dimension_numbers = #tpu.dot_dimension_numbers<[1], [0], [0], [1], [0, 0, 1, 1], [], []>} : vector<128x16xf32>, vector<16x32xf32>, vector<128x32xf32> -> vector<128x32xf32>
    %219 = arith.mulf %218, %197 : vector<128x32xf32>
    %cst_130 = arith.constant dense<0.000000e+00> : vector<16x32xf32>
    %220 = tpu.matmul %217, %219, %cst_130 {dimension_numbers = #tpu.dot_dimension_numbers<[1], [0], [0], [1], [0, 0, 1, 1], [], []>} : vector<16x128xf32>, vector<128x32xf32>, vector<16x32xf32> -> vector<16x32xf32>
    %c880 = arith.constant 880 : index
    %c0_131 = arith.constant 0 : index
    %221 = vector.load %arg3[%c880, %c0_131] : memref<1296x32xf32, #tpu.memory_space<vmem>>, vector<32x32xf32>
    %cst_132 = arith.constant dense<0.000000e+00> : vector<16x32xf32>
    %222 = tpu.matmul %220, %221, %cst_132 {dimension_numbers = #tpu.dot_dimension_numbers<[1], [0], [0], [1], [0, 0, 1, 1], [], []>} : vector<16x32xf32>, vector<32x32xf32>, vector<16x32xf32> -> vector<16x32xf32>
    %c84 = arith.constant 84 : index
    %c0_133 = arith.constant 0 : index
    %223 = vector.load %arg4[%c84, %c0_133] : memref<328x128xf32, #tpu.memory_space<vmem>>, vector<1x32xf32>
    %224 = vector.broadcast %223 : vector<1x32xf32> to vector<16x32xf32>
    %225 = arith.addf %222, %224 : vector<16x32xf32>
    %226 = arith.addf %177, %225 : vector<16x32xf32>
    %c86 = arith.constant 86 : index
    %c0_134 = arith.constant 0 : index
    %227 = vector.load %arg4[%c86, %c0_134] : memref<328x128xf32, #tpu.memory_space<vmem>>, vector<1x32xf32>
    %c87 = arith.constant 87 : index
    %c0_135 = arith.constant 0 : index
    %228 = vector.load %arg4[%c87, %c0_135] : memref<328x128xf32, #tpu.memory_space<vmem>>, vector<1x32xf32>
    %cst_136 = arith.constant dense<0.000000e+00> : vector<16xf32>
    %229 = vector.multi_reduction <add>, %226, %cst_136 [1] : vector<16x32xf32> to vector<16xf32>
    %230 = vector.shape_cast %229 : vector<16xf32> to vector<16x1xf32>
    %cst_137 = arith.constant 3.200000e+01 : f32
    %231 = vector.broadcast %cst_137 : f32 to vector<16x1xf32>
    %232 = arith.divf %230, %231 : vector<16x1xf32>
    %233 = vector.broadcast %232 : vector<16x1xf32> to vector<16x32xf32>
    %234 = arith.subf %226, %233 : vector<16x32xf32>
    %235 = arith.mulf %234, %234 : vector<16x32xf32>
    %cst_138 = arith.constant dense<0.000000e+00> : vector<16xf32>
    %236 = vector.multi_reduction <add>, %235, %cst_138 [1] : vector<16x32xf32> to vector<16xf32>
    %237 = vector.shape_cast %236 : vector<16xf32> to vector<16x1xf32>
    %cst_139 = arith.constant 3.200000e+01 : f32
    %238 = vector.broadcast %cst_139 : f32 to vector<16x1xf32>
    %239 = arith.divf %237, %238 : vector<16x1xf32>
    %cst_140 = arith.constant 9.99999974E-6 : f32
    %240 = vector.broadcast %cst_140 : f32 to vector<16x1xf32>
    %241 = arith.addf %239, %240 : vector<16x1xf32>
    %242 = math.rsqrt %241 : vector<16x1xf32>
    %243 = vector.broadcast %242 : vector<16x1xf32> to vector<16x32xf32>
    %244 = arith.mulf %234, %243 : vector<16x32xf32>
    %245 = vector.broadcast %227 : vector<1x32xf32> to vector<16x32xf32>
    %246 = arith.mulf %244, %245 : vector<16x32xf32>
    %247 = vector.broadcast %228 : vector<1x32xf32> to vector<16x32xf32>
    %248 = arith.addf %246, %247 : vector<16x32xf32>
    %c48 = arith.constant 48 : index
    %c0_141 = arith.constant 0 : index
    %249 = vector.load %arg4[%c48, %c0_141] : memref<328x128xf32, #tpu.memory_space<vmem>>, vector<32x128xf32>
    %cst_142 = arith.constant dense<0.000000e+00> : vector<16x128xf32>
    %250 = tpu.matmul %248, %249, %cst_142 {dimension_numbers = #tpu.dot_dimension_numbers<[1], [0], [0], [1], [0, 0, 1, 1], [], []>} : vector<16x32xf32>, vector<32x128xf32>, vector<16x128xf32> -> vector<16x128xf32>
    %c80 = arith.constant 80 : index
    %c0_143 = arith.constant 0 : index
    %251 = vector.load %arg4[%c80, %c0_143] : memref<328x128xf32, #tpu.memory_space<vmem>>, vector<1x128xf32>
    %252 = vector.broadcast %251 : vector<1x128xf32> to vector<16x128xf32>
    %253 = arith.addf %250, %252 : vector<16x128xf32>
    %cst_144 = arith.constant 0.000000e+00 : f32
    %254 = vector.broadcast %cst_144 : f32 to vector<16x128xf32>
    %255 = arith.maximumf %253, %254 : vector<16x128xf32>
    %c912 = arith.constant 912 : index
    %c0_145 = arith.constant 0 : index
    %256 = vector.load %arg3[%c912, %c0_145] : memref<1296x32xf32, #tpu.memory_space<vmem>>, vector<128x32xf32>
    %cst_146 = arith.constant dense<0.000000e+00> : vector<16x32xf32>
    %257 = tpu.matmul %255, %256, %cst_146 {dimension_numbers = #tpu.dot_dimension_numbers<[1], [0], [0], [1], [0, 0, 1, 1], [], []>} : vector<16x128xf32>, vector<128x32xf32>, vector<16x32xf32> -> vector<16x32xf32>
    %c85 = arith.constant 85 : index
    %c0_147 = arith.constant 0 : index
    %258 = vector.load %arg4[%c85, %c0_147] : memref<328x128xf32, #tpu.memory_space<vmem>>, vector<1x32xf32>
    %259 = vector.broadcast %258 : vector<1x32xf32> to vector<16x32xf32>
    %260 = arith.addf %257, %259 : vector<16x32xf32>
    %261 = arith.addf %248, %260 : vector<16x32xf32>
    %c88 = arith.constant 88 : index
    %c0_148 = arith.constant 0 : index
    %262 = vector.load %arg4[%c88, %c0_148] : memref<328x128xf32, #tpu.memory_space<vmem>>, vector<1x32xf32>
    %c89 = arith.constant 89 : index
    %c0_149 = arith.constant 0 : index
    %263 = vector.load %arg4[%c89, %c0_149] : memref<328x128xf32, #tpu.memory_space<vmem>>, vector<1x32xf32>
    %cst_150 = arith.constant dense<0.000000e+00> : vector<16xf32>
    %264 = vector.multi_reduction <add>, %261, %cst_150 [1] : vector<16x32xf32> to vector<16xf32>
    %265 = vector.shape_cast %264 : vector<16xf32> to vector<16x1xf32>
    %cst_151 = arith.constant 3.200000e+01 : f32
    %266 = vector.broadcast %cst_151 : f32 to vector<16x1xf32>
    %267 = arith.divf %265, %266 : vector<16x1xf32>
    %268 = vector.broadcast %267 : vector<16x1xf32> to vector<16x32xf32>
    %269 = arith.subf %261, %268 : vector<16x32xf32>
    %270 = arith.mulf %269, %269 : vector<16x32xf32>
    %cst_152 = arith.constant dense<0.000000e+00> : vector<16xf32>
    %271 = vector.multi_reduction <add>, %270, %cst_152 [1] : vector<16x32xf32> to vector<16xf32>
    %272 = vector.shape_cast %271 : vector<16xf32> to vector<16x1xf32>
    %cst_153 = arith.constant 3.200000e+01 : f32
    %273 = vector.broadcast %cst_153 : f32 to vector<16x1xf32>
    %274 = arith.divf %272, %273 : vector<16x1xf32>
    %cst_154 = arith.constant 9.99999974E-6 : f32
    %275 = vector.broadcast %cst_154 : f32 to vector<16x1xf32>
    %276 = arith.addf %274, %275 : vector<16x1xf32>
    %277 = math.rsqrt %276 : vector<16x1xf32>
    %278 = vector.broadcast %277 : vector<16x1xf32> to vector<16x32xf32>
    %279 = arith.mulf %269, %278 : vector<16x32xf32>
    %280 = vector.broadcast %262 : vector<1x32xf32> to vector<16x32xf32>
    %281 = arith.mulf %279, %280 : vector<16x32xf32>
    %282 = vector.broadcast %263 : vector<1x32xf32> to vector<16x32xf32>
    %283 = arith.addf %281, %282 : vector<16x32xf32>
    %c97 = arith.constant 97 : index
    %c0_155 = arith.constant 0 : index
    %284 = vector.load %arg4[%c97, %c0_155] : memref<328x128xf32, #tpu.memory_space<vmem>>, vector<1x32xf32>
    %285 = vector.broadcast %284 : vector<1x32xf32> to vector<16x32xf32>
    %286 = arith.mulf %283, %285 : vector<16x32xf32>
    %c98 = arith.constant 98 : index
    %c0_156 = arith.constant 0 : index
    %287 = vector.load %arg4[%c98, %c0_156] : memref<328x128xf32, #tpu.memory_space<vmem>>, vector<1x32xf32>
    %288 = vector.broadcast %287 : vector<1x32xf32> to vector<16x32xf32>
    %289 = arith.addf %286, %288 : vector<16x32xf32>
    %cst_157 = arith.constant 0.000000e+00 : f32
    %290 = vector.broadcast %cst_157 : f32 to vector<16x32xf32>
    %291 = arith.maximumf %289, %290 : vector<16x32xf32>
    %c104 = arith.constant 104 : index
    %c0_158 = arith.constant 0 : index
    %292 = vector.load %arg4[%c104, %c0_158] : memref<328x128xf32, #tpu.memory_space<vmem>>, vector<32x128xf32>
    %cst_159 = arith.constant dense<0.000000e+00> : vector<16x128xf32>
    %293 = tpu.matmul %291, %292, %cst_159 {dimension_numbers = #tpu.dot_dimension_numbers<[1], [0], [0], [1], [0, 0, 1, 1], [], []>} : vector<16x32xf32>, vector<32x128xf32>, vector<16x128xf32> -> vector<16x128xf32>
    %c99 = arith.constant 99 : index
    %c0_160 = arith.constant 0 : index
    %294 = vector.load %arg4[%c99, %c0_160] : memref<328x128xf32, #tpu.memory_space<vmem>>, vector<1x128xf32>
    %295 = vector.broadcast %294 : vector<1x128xf32> to vector<16x128xf32>
    %296 = arith.addf %293, %295 : vector<16x128xf32>
    %cst_161 = arith.constant dense<0xFF800000> : vector<16xf32>
    %297 = vector.multi_reduction <maximumf>, %296, %cst_161 [1] : vector<16x128xf32> to vector<16xf32>
    %298 = vector.shape_cast %297 : vector<16xf32> to vector<16x1xf32>
    %299 = vector.broadcast %298 : vector<16x1xf32> to vector<16x128xf32>
    %300 = arith.subf %296, %299 : vector<16x128xf32>
    %301 = math.exp %300 : vector<16x128xf32>
    %cst_162 = arith.constant dense<0.000000e+00> : vector<16xf32>
    %302 = vector.multi_reduction <add>, %301, %cst_162 [1] : vector<16x128xf32> to vector<16xf32>
    %303 = vector.shape_cast %302 : vector<16xf32> to vector<16x1xf32>
    %304 = vector.broadcast %303 : vector<16x1xf32> to vector<16x128xf32>
    %305 = arith.divf %301, %304 : vector<16x128xf32>
    %c0_163 = arith.constant 0 : index
    %c0_164 = arith.constant 0 : index
    %306 = vector.load %arg5[%c0_163, %c0_164] : memref<16x128xf32, #tpu.memory_space<vmem>>, vector<16x128xf32>
    tpu.vector_store %arg5[%c0_163, %c0_164], %305 {strides = array<i32>} : memref<16x128xf32, #tpu.memory_space<vmem>>, vector<16x128xf32>,
    return
  }
  func.func @transform_0(%arg0: i32, %arg1: memref<16xi32, #tpu.memory_space<smem>>) -> (i32, i32) {
    %c0_i32 = arith.constant 0 : i32
    %c0_i32_0 = arith.constant 0 : i32
    %c0_i32_1 = arith.constant 0 : i32
    return %c0_i32, %c0_i32_0 : i32, i32
  }
  func.func @transform_1(%arg0: i32, %arg1: memref<16xi32, #tpu.memory_space<smem>>) -> (i32, i32) {
    %c0_i32 = arith.constant 0 : i32
    %c0_i32_0 = arith.constant 0 : i32
    %c0_i32_1 = arith.constant 0 : i32
    return %c0_i32, %c0_i32_0 : i32, i32
  }
  func.func @transform_2(%arg0: i32, %arg1: memref<16xi32, #tpu.memory_space<smem>>) -> (i32, i32) {
    %c0_i32 = arith.constant 0 : i32
    %c0_i32_0 = arith.constant 0 : i32
    %c0_i32_1 = arith.constant 0 : i32
    return %c0_i32, %c0_i32_0 : i32, i32
  }
  func.func @transform_3(%arg0: i32, %arg1: memref<16xi32, #tpu.memory_space<smem>>) -> (i32, i32) {
    %c0_i32 = arith.constant 0 : i32
    %c0_i32_0 = arith.constant 0 : i32
    %c0_i32_1 = arith.constant 0 : i32
    return %c0_i32, %c0_i32_0 : i32, i32
  }
}

</mosaic_0001>

<bundles_post_ra>
// kernel: eq.9
= control target key start
LH: loop header
LB: loop body
LE: loop exit
PB: predicated region body
PF: predicated region fallthrough
CT: control target
= control target key end

     0   :  { %vm7_vm0 = vcmask 64512   ;;  %s39_s0 = inlined_call_operand.vmem [shape: s32[16], index: 0, kind: input, shape index: {}]   ;;  %s40_s1 = inlined_call_operand.vmem [shape: s32[2,8], index: 1, kind: output, shape index: {}]  }
   0x1   :  { %v4_v0 = vld [vmem:[%s39_s0] sm:$0x1]  ;;  %s22_s0 = smov 120  }
   0x2   :  { %5 = vst [vmem:[#allocation1] sm:$0x1] %v4_v0 }
   0x9   :  { %v9_v1 = vld [vmem:[#allocation1] sm:$0x1]  }
   0xa   :  { %v6_v2 = vld [vmem:[#allocation1] sm:$0x1]   ;;  %10 = vrot.lane.b32.xlu0 %v9_v1, %s22_s0 }
   0xb   :  { %8 = vst.msk [vmem:[#allocation0] sm:$0x1] %vm7_vm0, %v6_v2  }
  0x7c   :  { %v11_v3 = vpop.permute.xlu0 %10  }
  0x7d   :  { %14 = vst.msk [vmem:[#allocation0 + $0x1] sm:$0x1] %vm7_vm0, %v11_v3  }
  0x84   :  { %v17_v4 = vld [vmem:[#allocation0] sm:$0x3] }
  0x85   :  { %20 = vst [vmem:[%s40_s1] sm:$0x3] %v17_v4 }

// kernel: sequence_model_forward.1
= control target key start
LH: loop header
LB: loop body
LE: loop exit
PB: predicated region body
PF: predicated region fallthrough
CT: control target
= control target key end

     0   :  { %s1659_s18 = smov [#allocation4]   ;;  %s2648_s0 = inlined_call_operand.vmem [shape: s32[16], index: 0, kind: input, shape index: {}]   ;;  %s2649_s1 = inlined_call_operand.vmem [shape: f32[16,16], index: 1, kind: input, shape index: {}]   ;;  %s2650_s2 = inlined_call_operand.vmem [shape: f32[1296,32], index: 2, kind: input, shape index: {}]   ;;  %s2651_s3 = inlined_call_operand.vmem [shape: f32[328,128], index: 3, kind: input, shape index: {}]   ;;  %s2652_s4 = inlined_call_operand.vmem [shape: f32[16,128], index: 4, kind: output, shape index: {}]  }
   0x1   :  { %s10_s17 = sshll.u32 %s2648_s0, 4  ;;  %s11_s17 = int_to_ptr.vmem [resolvable:$true] %s10_s17 }
   0x2   :  { %13 = dma.vmem_to_smem %s11_s17, 16, %s1659_s18, [#allocation3] }
   0x3   :  { %1657 = dma.done.wait [#allocation3], 16 }
   0x4   :  { %1658 = vsyncadd [#allocation3], 4294967280 }
   0x5   :  { %16 = sfence }
   0x6   :  { %v91_v0 = vld [vmem:[%s2650_s2 + $0x208] sm:$0xff]  ;;  %v90_v1 = vld [vmem:[%s2650_s2 + $0x200] sm:$0xff]  ;;  %s23_s23 = sld [smem:[#allocation4]]  ;;  %vm94_vm0 = vcmask 130048   ;;  %vm26_vm1 = vcmask 253952   ;;  %v129_v16 = vld [vmem:[%s2650_s2 + $0x218] sm:$0xff] }
   0x7   :  { %115 = vmatpush.msra.mxu0 %v91_v0  ;;  %v88_v2 = vld [vmem:[%s2649_s1] sm:$0xff]  ;;  %v131_v3 = vld [vmem:[%s2650_s2 + $0x228] sm:$0xff]  ;;  %s1489_s29 = sld [smem:[#allocation4 + $0x1]]  ;;  %v165_v17 = vld [vmem:[%s2650_s2 + $0x238] sm:$0xff]  ;;  %vm134_vm2 = vcmask 261120  }
   0x8   :  { %v167_v4 = vld [vmem:[%s2650_s2 + $0x248] sm:$0xff]  ;;  %153 = vmatpush.msra.mxu1 %v131_v3  ;;  %s1490_s30 = sld [smem:[#allocation4 + $0x2]]  ;;  %1572 = vmatpush.msra.mxu3 %v131_v3  ;;  %v130_v14 = vld [vmem:[%s2650_s2 + $0x220] sm:$0xff]  ;;  %v128_v21 = vld [vmem:[%s2650_s2 + $0x210] sm:$0xff] }
   0x9   :  { %182 = vmatpush.msra.mxu2 %v167_v4  ;;  %116 = vmatpush.msra.mxu0 %v90_v1  ;;  %s1491_s5 = sld [smem:[#allocation4 + $0x3]]  ;;  %v89_v7 = vld [vmem:[%s2649_s1 + $0x8] sm:$0xff]  ;;  %v166_v15 = vld [vmem:[%s2650_s2 + $0x240] sm:$0xff]  ;;  %v164_v22 = vld [vmem:[%s2650_s2 + $0x230] sm:$0xff] }
   0xa   :  { %1504 = vmatmul.msk.f32.vlgmr.msra.gmra.mxu0 %vm94_vm0, %v88_v2  ;;  %s1492_s6 = sld [smem:[#allocation4 + $0x4]]  ;;  %154 = vmatpush.msra.mxu1 %v130_v14  ;;  %v196_v28 = vld [vmem:[%s2650_s2 + $0x268] sm:$0xff]  ;;  %v195_v29 = vld [vmem:[%s2650_s2 + $0x260] sm:$0xff]  ;;  %v194_v30 = vld [vmem:[%s2650_s2 + $0x258] sm:$0xff] }
   0xb   :  { %s1493_s7 = sld [smem:[#allocation4 + $0x5]]  ;;  %183 = vmatpush.msra.mxu2 %v166_v15  ;;  %1573 = vmatpush.msra.mxu3 %v130_v14  ;;  %v193_v31 = vld [vmem:[%s2650_s2 + $0x250] sm:$0xff]  ;;  %v1579_v32 = vld [vmem:[%s2651_s3 + $0x60] ss:$0 sm:$0xff]  ;;  %v1581_v41 = vld [vmem:[%s2651_s3 + $0x22] ss:$0 sm:$0xff] }
   0xc   :  { %s24_s10 = scalar_lea.vmem %s2650_s2, %s23_s23  ;;  %s1494_s11 = sld [smem:[#allocation4 + $0x6]]  ;;  %155 = vmatpush.msra.mxu1 %v129_v16  ;;  %v1843_v42 = vld [vmem:[%s2651_s3 + $0xc0] sm:$0xff]  ;;  %v1848_v43 = vld [vmem:[%s2651_s3 + $0xb8] sm:$0xff]  ;;  %v1858_v54 = vld [vmem:[%s2650_s2 + $0x490] sm:$0xff] }
   0xd   :  { %v25_v5 = vld [vmem:[%s24_s10] sm:$0x1]  ;;  %s29_s14 = scalar_lea.vmem %s2650_s2, %s1489_s29  ;;  %s1495_s15 = sld [smem:[#allocation4 + $0x7]]  ;;  %184 = vmatpush.msra.mxu2 %v165_v17  ;;  %1574 = vmatpush.msra.mxu3 %v129_v16  ;;  %v1582_v50 = vld [vmem:[%s2651_s3 + $0x23] ss:$0 sm:$0xff]  ;;  %v1869_v59 = vld [vmem:[%s2650_s2 + $0x498] sm:$0xff] }
   0xe   :  { %27 = vst.msk [vmem:[#allocation2] sm:$0x1] %vm26_vm1, %v25_v5  ;;  %v30_v6 = vld [vmem:[%s29_s14] sm:$0x1]  ;;  %s33_s18 = scalar_lea.vmem %s2650_s2, %s1490_s30  ;;  %s1497_s9 = sld [smem:[#allocation4 + $0x9]]  ;;  %156 = vmatpush.msra.mxu1 %v128_v21  ;;  %336 = vmatpush.msrb.mxu0 %v1843_v42  ;;  %v1883_v61 = vld [vmem:[%s2650_s2 + $0x4a8] sm:$0xff] }
   0xf   :  { %31 = vst.msk [vmem:[#allocation2 + $0x1] sm:$0x1] %vm26_vm1, %v30_v6  ;;  %v34_v8 = vld [vmem:[%s33_s18] sm:$0x1]  ;;  %s37_s23 = scalar_lea.vmem %s2650_s2, %s1491_s5  ;;  %s1498_s10 = sld [smem:[#allocation4 + $0xa]]  ;;  %185 = vmatpush.msra.mxu2 %v164_v22  ;;  %1575 = vmatpush.msra.mxu3 %v128_v21  ;;  %v1890_v62 = vld [vmem:[%s2650_s2 + $0x4b0] sm:$0xff] }
  0x10   :  { %35 = vst.msk [vmem:[#allocation2 + $0x2] sm:$0x1] %vm26_vm1, %v34_v8  ;;  %v38_v9 = vld [vmem:[%s37_s23] sm:$0x1]  ;;  %s41_s0 = scalar_lea.vmem %s2650_s2, %s1492_s6  ;;  %s1741_s12 = sld [smem:[#allocation4 + $0xb]]  ;;  %337 = vmatpush.msrb.mxu0 %v1848_v43  ;;  %v1897_v0 = vld [vmem:[%s2650_s2 + $0x4b8] sm:$0xff] }
  0x11   :  { %39 = vst.msk [vmem:[#allocation2 + $0x3] sm:$0x1] %vm26_vm1, %v38_v9  ;;  %v42_v10 = vld [vmem:[%s41_s0] sm:$0x1]  ;;  %s45_s1 = scalar_lea.vmem %s2650_s2, %s1493_s7  ;;  %s1496_s7 = sld [smem:[#allocation4 + $0x8]]  ;;  %211 = vmatpush.msrb.mxu3 %v196_v28  ;;  %v1911_v4 = vld [vmem:[%s2650_s2 + $0x4c8] sm:$0xff] }
  0x12   :  { %1505 = vmatmul.msk.f32.gmra.mxu0 %vm94_vm0, %v89_v7  ;;  %43 = vst.msk [vmem:[#allocation2 + $0x4] sm:$0x1] %vm26_vm1, %v42_v10  ;;  %v46_v11 = vld [vmem:[%s45_s1] sm:$0x1]  ;;  %s49_s30 = scalar_lea.vmem %s2650_s2, %s1494_s11  ;;  %s1743_s13 = sld [smem:[#allocation4 + $0xc]]  ;;  %v1923_v6 = vld [vmem:[%s2651_s3 + $0x98] sm:$0xff] }
  0x13   :  { %47 = vst.msk [vmem:[#allocation2 + $0x5] sm:$0x1] %vm26_vm1, %v46_v11  ;;  %v50_v12 = vld [vmem:[%s49_s30] sm:$0x1]  ;;  %s53_s8 = scalar_lea.vmem %s2650_s2, %s1495_s15  ;;  %s1745_s11 = sld [smem:[#allocation4 + $0xd]]  ;;  %212 = vmatpush.msrb.mxu3 %v195_v29  ;;  %v1929_v9 = vld [vmem:[%s2651_s3 + $0x90] sm:$0xff] }
  0x14   :  { %51 = vst.msk [vmem:[#allocation2 + $0x6] sm:$0x1] %vm26_vm1, %v50_v12  ;;  %v54_v13 = vld [vmem:[%s53_s8] sm:$0x1]  ;;  %s1747_s14 = sld [smem:[#allocation4 + $0xe]]  ;;  %s61_s25 = scalar_lea.vmem %s2650_s2, %s1497_s9  ;;  %v1934_v10 = vld [vmem:[%s2650_s2 + $0x4d0] sm:$0xff] }
  0x15   :  { %55 = vst.msk [vmem:[#allocation2 + $0x7] sm:$0x1] %vm26_vm1, %v54_v13  ;;  %s1749_s16 = sld [smem:[#allocation4 + $0xf]]  ;;  %s65_s27 = scalar_lea.vmem %s2650_s2, %s1498_s10  ;;  %v62_v19 = vld [vmem:[%s61_s25] sm:$0x1]  ;;  %213 = vmatpush.msrb.mxu3 %v194_v30  ;;  %v1943_v13 = vld [vmem:[%s2651_s3 + $0x88] sm:$0xff] }
  0x16   :  { %s69_s8 = scalar_lea.vmem %s2650_s2, %s1741_s12  ;;  %v66_v20 = vld [vmem:[%s65_s27] sm:$0x1]  ;;  %63 = vst.msk [vmem:[#allocation2 + $0x9] sm:$0x1] %vm26_vm1, %v62_v19  ;;  %v1580_v12 = vld [vmem:[%s2651_s3 + $0x21] ss:$0 sm:$0xff] }
  0x17   :  { %s57_s18 = scalar_lea.vmem %s2650_s2, %s1496_s7  ;;  %v70_v23 = vld [vmem:[%s69_s8] sm:$0x1]  ;;  %67 = vst.msk [vmem:[#allocation2 + $0xa] sm:$0x1] %vm26_vm1, %v66_v20  ;;  %214 = vmatpush.msrb.mxu3 %v193_v31  ;;  %v1968_v21 = vld [vmem:[%s2650_s2 + $0x4e8] sm:$0xff]  ;;  %v1975_v22 = vld [vmem:[%s2650_s2 + $0x4f0] sm:$0xff] }
  0x18   :  { %s73_s15 = scalar_lea.vmem %s2650_s2, %s1743_s13  ;;  %v58_v18 = vld [vmem:[%s57_s18] sm:$0x1]  ;;  %71 = vst.msk [vmem:[#allocation2 + $0xb] sm:$0x1] %vm26_vm1, %v70_v23  ;;  %v1982_v23 = vld [vmem:[%s2650_s2 + $0x4f8] sm:$0xff] }
  0x19   :  { %s77_s19 = scalar_lea.vmem %s2650_s2, %s1745_s11  ;;  %59 = vst.msk [vmem:[#allocation2 + $0x8] sm:$0x1] %vm26_vm1, %v58_v18  ;;  %v74_v24 = vld [vmem:[%s73_s15] sm:$0x1]  ;;  %v1953_v18 = vld [vmem:[%s2650_s2 + $0x4d8] sm:$0xff] }
  0x1a   :  { %s81_s18 = scalar_lea.vmem %s2650_s2, %s1747_s14  ;;  %v78_v25 = vld [vmem:[%s77_s19] sm:$0x1]  ;;  %75 = vst.msk [vmem:[#allocation2 + $0xc] sm:$0x1] %vm26_vm1, %v74_v24 }
  0x1b   :  { %s85_s25 = scalar_lea.vmem %s2650_s2, %s1749_s16  ;;  %v82_v26 = vld [vmem:[%s81_s18] sm:$0x1]  ;;  %79 = vst.msk [vmem:[#allocation2 + $0xd] sm:$0x1] %vm26_vm1, %v78_v25  ;;  %v1996_v25 = vld [vmem:[%s2650_s2 + $0x508] sm:$0xff] }
  0x1c   :  { %v86_v27 = vld [vmem:[%s85_s25] sm:$0x1]  ;;  %83 = vst.msk [vmem:[#allocation2 + $0xe] sm:$0x1] %vm26_vm1, %v82_v26 }
  0x1d   :  { %87 = vst.msk [vmem:[#allocation2 + $0xf] sm:$0x1] %vm26_vm1, %v86_v27  ;;  %v124_v34 = vld [vmem:[#allocation2] sm:$0xff] }
  0x1e   :  { %v1876_v60 = vld [vmem:[%s2650_s2 + $0x4a0] sm:$0xff] }
  0x1f   :  { %v1904_v2 = vld [vmem:[%s2650_s2 + $0x4c0] sm:$0xff] }
  0x20   :  { %v1918_v5 = vld [vmem:[%s2651_s3 + $0xa0] sm:$0xff] }
  0x21   :  { %v1961_v20 = vld [vmem:[%s2650_s2 + $0x4e0] sm:$0xff] }
  0x22   :  { %v1989_v24 = vld [vmem:[%s2650_s2 + $0x500] sm:$0xff] }
  0x24   :  { %v125_v38 = vld [vmem:[#allocation2 + $0x8] sm:$0xff] }
  0x87   :  { %v118_v33 = vpop.f32.mrf.mxu0 }
  0x88   :  { %v119_v35 = vadd.f32 %v1579_v32, %v118_v33 }
  0x8a   :  { %v1821_v36 = vadd.f32 %v124_v34, %v119_v35  ;;  %v2017_v34 = vld [vmem:[%s2651_s3 + $0xa8] sm:$0xff] }
  0x8c   :  { %1506 = vmatmul.msk.f32.vlgmr.msra.gmra.mxu1 %vm134_vm2, %v1821_v36  ;;  %1508 = vmatmul.msk.f32.vlgmr.msra.gmra.mxu2 %vm134_vm2, %v1821_v36 }
  0x8f   :  { %v121_v37 = vpop.f32.mrf.mxu0 }
  0x90   :  { %v122_v39 = vadd.f32 %v1579_v32, %v121_v37 }
  0x92   :  { %v1827_v40 = vadd.f32 %v125_v38, %v122_v39  ;;  %v2026_v39 = vld [vmem:[%s2651_s3 + $0xb0] sm:$0xff] }
  0x94   :  { %1507 = vmatmul.msk.f32.vlgmr.msra.gmra.mxu3 %vm134_vm2, %v1827_v40  ;;  %1509 = vmatmul.msk.f32.gmra.mxu2 %vm134_vm2, %v1827_v40 }
  0x9c   :  { %1510 = vmatmul.msk.f32.vlgmr.msrb.gmra.mxu3 %vm134_vm2, %v1821_v36 }
  0xa4   :  { %1511 = vmatmul.msk.f32.gmra.mxu3 %vm134_vm2, %v1827_v40 }
 0x109   :  { %v158_v14 = vpop.f32.mrf.mxu1 }
 0x10a   :  { %v159_v17 = vadd.f32 %v1580_v12, %v158_v14 }
 0x10f   :  { %v187_v44 = vpop.f32.mrf.mxu2 }
 0x110   :  { %v188_v45 = vadd.f32 %v1581_v41, %v187_v44 }
 0x112   :  { %278 = vxpose.xlu0.b32.start [1/2] (short) (narrow) %v188_v45, 32 }
 0x117   :  { %v161_v46 = vpop.f32.mrf.mxu3  ;;  %v190_v47 = vpop.f32.mrf.mxu2 }
 0x118   :  { %v191_v48 = vadd.f32 %v1581_v41, %v190_v47  ;;  %v162_v19 = vadd.f32 %v1580_v12, %v161_v46 }
 0x11a   :  { %279 = vxpose.xlu0.b32.end [2/2] (short) (narrow) %v191_v48, 32 }
 0x11f   :  { %v216_v49 = vpop.f32.mrf.mxu3 }
 0x120   :  { %v217_v53 = vadd.f32 %v1582_v50, %v216_v49  ;;  %v2035_v49 = vld [vmem:[%s2651_s3 + $0x140] sm:$0xff] }
 0x127   :  { %v219_v51 = vpop.f32.mrf.mxu3 }
 0x128   :  { %v220_v52 = vadd.f32 %v1582_v50, %v219_v51  ;;  %v2041_v50 = vld [vmem:[%s2651_s3 + $0x138] sm:$0xff]  ;;  %v2047_v51 = vld [vmem:[%s2651_s3 + $0x130] sm:$0xff] }
 0x12a   :  { %491 = vmatpush.msra.mxu3 %v220_v52  ;;  %v2053_v52 = vld [vmem:[%s2651_s3 + $0x128] sm:$0xff] }
 0x12c   :  { %492 = vmatpush.msra.mxu3 %v217_v53 }
 0x12d   :  { %1518 = vmatmul.msk.f32.vlgmr.msra.gmra.mxu3 %vm94_vm0, %v1858_v54 }
 0x135   :  { %1519 = vmatmul.msk.f32.gmra.mxu3 %vm94_vm0, %v1869_v59 }
 0x13d   :  { %1520 = vmatmul.msk.f32.gmra.mxu3 %vm94_vm0, %v1876_v60 }
 0x145   :  { %1521 = vmatmul.msk.f32.gmra.mxu3 %vm94_vm0, %v1883_v61 }
 0x14d   :  { %1522 = vmatmul.msk.f32.gmra.mxu3 %vm94_vm0, %v1890_v62 }
 0x155   :  { %1523 = vmatmul.msk.f32.gmra.mxu3 %vm94_vm0, %v1897_v0 }
 0x15d   :  { %1524 = vmatmul.msk.f32.gmra.mxu3 %vm94_vm0, %v1904_v2 }
 0x165   :  { %1525 = vmatmul.msk.f32.gmra.mxu3 %vm94_vm0, %v1911_v4 }
 0x16d   :  { %1526 = vmatmul.msk.f32.gmra.mxu3 %vm94_vm0, %v1934_v10 }
 0x175   :  { %1527 = vmatmul.msk.f32.gmra.mxu3 %vm94_vm0, %v1953_v18 }
 0x17d   :  { %1528 = vmatmul.msk.f32.gmra.mxu3 %vm94_vm0, %v1961_v20 }
 0x185   :  { %1529 = vmatmul.msk.f32.gmra.mxu3 %vm94_vm0, %v1968_v21 }
 0x18d   :  { %1530 = vmatmul.msk.f32.gmra.mxu3 %vm94_vm0, %v1975_v22 }
 0x195   :  { %1531 = vmatmul.msk.f32.gmra.mxu3 %vm94_vm0, %v1982_v23 }
 0x19d   :  { %1532 = vmatmul.msk.f32.gmra.mxu3 %vm94_vm0, %v1989_v24 }
 0x1a5   :  { %1533 = vmatmul.msk.f32.gmra.mxu3 %vm94_vm0, %v1996_v25 }
 0x1b0   :  { %v2000_v26 = vpop.f32.mrf.mxu3 }
 0x1b6   :  { %v294_v55 = vpop.trf.xlu0 }
 0x1b7   :  { %1512 = vmatmul.msk.f32.vlgmr.msrb.gmra.mxu0 %vm94_vm0, %v294_v55  ;;  %v2059_v55 = vld [vmem:[%s2651_s3 + $0x120] sm:$0xff] }
 0x1b8   :  { %v2002_v27 = vpop.f32.mrf.mxu3 }
 0x1be   :  { %v295_v56 = vpop.trf.xlu0 }
 0x1bf   :  { %1513 = vmatmul.msk.f32.gmra.mxu0 %vm94_vm0, %v295_v56  ;;  %v2065_v56 = vld [vmem:[%s2651_s3 + $0x118] sm:$0xff] }
 0x1c0   :  { %v2004_v28 = vpop.f32.mrf.mxu3 }
 0x1c6   :  { %v296_v57 = vpop.trf.xlu0 }
 0x1c7   :  { %1514 = vmatmul.msk.f32.gmra.mxu0 %vm94_vm0, %v296_v57  ;;  %v2071_v57 = vld [vmem:[%s2651_s3 + $0x110] sm:$0xff] }
 0x1c8   :  { %v2006_v29 = vpop.f32.mrf.mxu3 }
 0x1ce   :  { %v297_v58 = vpop.trf.xlu0 }
 0x1cf   :  { %1515 = vmatmul.msk.f32.gmra.mxu0 %vm94_vm0, %v297_v58  ;;  %v2077_v58 = vld [vmem:[%s2651_s3 + $0x108] sm:$0xff] }
 0x1d0   :  { %v2008_v30 = vpop.f32.mrf.mxu3 }
 0x1d8   :  { %v2010_v31 = vpop.f32.mrf.mxu3 }
 0x1e0   :  { %v2012_v32 = vpop.f32.mrf.mxu3 }
 0x1e8   :  { %v515_v33 = vpop.f32.mrf.mxu3 }
 0x1f0   :  { %v518_v38 = vpop.f32.mrf.mxu3 }
 0x1f8   :  { %v521_v45 = vpop.f32.mrf.mxu3 }
 0x200   :  { %v524_v46 = vpop.f32.mrf.mxu3 }
 0x208   :  { %v527_v47 = vpop.f32.mrf.mxu3 }
 0x210   :  { %v530_v48 = vpop.f32.mrf.mxu3 }
 0x218   :  { %v533_v53 = vpop.f32.mrf.mxu3 }
 0x234   :  { %v339_v63 = vpop.f32.mrf.mxu0 }
 0x235   :  { %v351_v16 = vmul.f32 %v339_v63, %v1943_v13  ;;  %v536_v63 = vpop.f32.mrf.mxu3 }
 0x23c   :  { %v342_v1 = vpop.f32.mrf.mxu0 }
 0x23d   :  { %v352_v15 = vmul.f32 %v342_v1, %v1929_v9  ;;  %v2083_v1 = vld [vmem:[%s2651_s3 + $0x100] sm:$0xff]  ;;  %v539_v12 = vpop.f32.mrf.mxu3 }
 0x244   :  { %v345_v3 = vpop.f32.mrf.mxu0 }
 0x245   :  { %v353_v11 = vmul.f32 %v345_v3, %v1923_v6  ;;  %v2089_v3 = vld [vmem:[%s2651_s3 + $0xf8] sm:$0xff] }
 0x24c   :  { %v348_v7 = vpop.f32.mrf.mxu0 }
 0x24d   :  { %v354_v8 = vmul.f32 %v348_v7, %v1918_v5  ;;  %v2095_v7 = vld [vmem:[%s2650_s2 + $0x480] sm:$0xff] }
 0x24e   :  { %v556_v14 = vmul.f32 %v536_v63, %v2095_v7 }
 0x24f   :  { %373 = vmatpush.msrb.mxu1 %v354_v8  ;;  %v2100_v8 = vld [vmem:[%s2650_s2 + $0x488] sm:$0xff] }
 0x251   :  { %374 = vmatpush.msrb.mxu1 %v353_v11  ;;  %v2105_v11 = vld [vmem:[%s2650_s2 + $0x478] sm:$0xff] }
 0x253   :  { %375 = vmatpush.msrb.mxu1 %v352_v15  ;;  %v557_v15 = vmul.f32 %v539_v12, %v2100_v8 }
 0x255   :  { %376 = vmatpush.msrb.mxu1 %v351_v16  ;;  %v2112_v16 = vld [vmem:[%s2650_s2 + $0x470] sm:$0xff]  ;;  %558 = vmatpush.msra.mxu0 %v557_v15 }
 0x256   :  { %1516 = vmatmul.msk.f32.vlgmr.msrb.gmra.mxu1 %vm134_vm2, %v159_v17  ;;  %v555_v17 = vmul.f32 %v533_v53, %v2105_v11  ;;  %v2130_v53 = vld [vmem:[%s2650_s2 + $0x458] sm:$0xff] }
 0x257   :  { %394 = vmatpush.msra.mxu1 %v2035_v49  ;;  %559 = vmatpush.msra.mxu0 %v556_v14  ;;  %2667 = vst [vmem:[#allocation8_spill] sm:$0xff] %v2130_v53  ;;  %v551_v14 = vmul.f32 %v521_v45, %v2130_v53  ;;  %v2154_v45 = vld [vmem:[%s2650_s2 + $0x438] sm:$0xff] }
 0x258   :  { %2671 = vst [vmem:[#allocation12_spill] sm:$0xff] %v2154_v45 }
 0x259   :  { %395 = vmatpush.msra.mxu1 %v2041_v50  ;;  %560 = vmatpush.msra.mxu0 %v555_v17 }
 0x25b   :  { %396 = vmatpush.msra.mxu1 %v2047_v51 }
 0x25d   :  { %397 = vmatpush.msra.mxu1 %v2053_v52 }
 0x25e   :  { %1517 = vmatmul.msk.f32.gmra.mxu1 %vm134_vm2, %v162_v19  ;;  %v2118_v19 = vld [vmem:[%s2650_s2 + $0x468] sm:$0xff] }
 0x25f   :  { %398 = vmatpush.msra.mxu1 %v2059_v55  ;;  %2665 = vst [vmem:[#allocation6_spill] sm:$0xff] %v2118_v19  ;;  %v553_v63 = vmul.f32 %v527_v47, %v2118_v19  ;;  %v2142_v47 = vld [vmem:[%s2650_s2 + $0x448] sm:$0xff] }
 0x260   :  { %2669 = vst [vmem:[#allocation10_spill] sm:$0xff] %v2142_v47  ;;  %v549_v17 = vmul.f32 %v515_v33, %v2142_v47  ;;  %v2168_v33 = vld [vmem:[%s2650_s2 + $0x428] sm:$0xff] }
 0x261   :  { %399 = vmatpush.msra.mxu1 %v2065_v56  ;;  %2673 = vst [vmem:[#allocation14_spill] sm:$0xff] %v2168_v33 }
 0x263   :  { %400 = vmatpush.msra.mxu1 %v2071_v57 }
 0x265   :  { %401 = vmatpush.msra.mxu1 %v2077_v58 }
 0x267   :  { %402 = vmatpush.msra.mxu1 %v2083_v1 }
 0x269   :  { %403 = vmatpush.msra.mxu1 %v2089_v3 }
 0x2d3   :  { %v378_v35 = vpop.f32.mrf.mxu1 }
 0x2d4   :  { %v2020_v37 = vadd.f32 %v378_v35, %v2017_v34  ;;  %v554_v35 = vmul.f32 %v530_v48, %v2112_v16  ;;  %v2136_v48 = vld [vmem:[%s2650_s2 + $0x450] sm:$0xff] }
 0x2d5   :  { %2668 = vst [vmem:[#allocation9_spill] sm:$0xff] %v2136_v48  ;;  %v550_v15 = vmul.f32 %v518_v38, %v2136_v48  ;;  %v2161_v38 = vld [vmem:[%s2650_s2 + $0x430] sm:$0xff] }
 0x2d6   :  { %384 = vmax.xlane.f32.xlu1 %v2020_v37  ;;  %561 = vmatpush.msra.mxu0 %v554_v35  ;;  %2672 = vst [vmem:[#allocation13_spill] sm:$0xff] %v2161_v38 }
 0x2d8   :  { %562 = vmatpush.msra.mxu0 %v553_v63  ;;  %v547_v63 = vmul.f32 %v2010_v31, %v2154_v45  ;;  %v2182_v31 = vld [vmem:[%s2650_s2 + $0x418] sm:$0xff]  ;;  %v583_v45 = vld [vmem:[%s2650_s2 + $0x280] sm:$0xff] }
 0x2d9   :  { %2675 = vst [vmem:[#allocation16_spill] sm:$0xff] %v2182_v31 }
 0x2db   :  { %v381_v41 = vpop.f32.mrf.mxu1 }
 0x2dc   :  { %v2029_v44 = vadd.f32 %v381_v41, %v2026_v39  ;;  %v2124_v41 = vld [vmem:[%s2650_s2 + $0x460] sm:$0xff] }
 0x2dd   :  { %2666 = vst [vmem:[#allocation7_spill] sm:$0xff] %v2124_v41  ;;  %v552_v12 = vmul.f32 %v524_v46, %v2124_v41  ;;  %v2148_v46 = vld [vmem:[%s2650_s2 + $0x440] sm:$0xff] }
 0x2de   :  { %386 = vmax.xlane.f32.xlu1 %v2029_v44  ;;  %2670 = vst [vmem:[#allocation11_spill] sm:$0xff] %v2148_v46  ;;  %v548_v35 = vmul.f32 %v2012_v32, %v2148_v46  ;;  %v2175_v32 = vld [vmem:[%s2650_s2 + $0x420] sm:$0xff] }
 0x2df   :  { %563 = vmatpush.msra.mxu0 %v552_v12  ;;  %v546_v12 = vmul.f32 %v2008_v30, %v2161_v38  ;;  %2674 = vst [vmem:[#allocation15_spill] sm:$0xff] %v2175_v32  ;;  %v2189_v30 = vld [vmem:[%s2650_s2 + $0x410] sm:$0xff]  ;;  %v584_v38 = vld [vmem:[%s2650_s2 + $0x288] sm:$0xff] }
 0x2e0   :  { %2676 = vst [vmem:[#allocation17_spill] sm:$0xff] %v2189_v30 }
 0x2e1   :  { %564 = vmatpush.msra.mxu0 %v551_v14  ;;  %v545_v14 = vmul.f32 %v2006_v29, %v2168_v33  ;;  %v542_v29 = vmul.f32 %v2000_v26, %v2189_v30  ;;  %v2210_v26 = vld [vmem:[%s2651_s3 + $0xe0] sm:$0xff] }
 0x2e3   :  { %565 = vmatpush.msra.mxu0 %v550_v15  ;;  %v544_v15 = vmul.f32 %v2004_v28, %v2175_v32  ;;  %v2204_v28 = vld [vmem:[%s2651_s3 + $0xe8] sm:$0xff] }
 0x2e5   :  { %566 = vmatpush.msra.mxu0 %v549_v17  ;;  %v543_v17 = vmul.f32 %v2002_v27, %v2182_v31  ;;  %v2216_v27 = vld [vmem:[%s2651_s3 + $0xd8] sm:$0xff] }
 0x2e7   :  { %567 = vmatpush.msra.mxu0 %v548_v35  ;;  %v2198_v35 = vld [vmem:[%s2651_s3 + $0xf0] sm:$0xff] }
 0x2e8   :  { %404 = vmatpush.msra.mxu1 %v2198_v35 }
 0x2e9   :  { %568 = vmatpush.msra.mxu0 %v547_v63  ;;  %v2222_v63 = vld [vmem:[%s2651_s3 + $0xd0] sm:$0xff] }
 0x2ea   :  { %405 = vmatpush.msra.mxu1 %v2204_v28 }
 0x2eb   :  { %569 = vmatpush.msra.mxu0 %v546_v12  ;;  %v2228_v12 = vld [vmem:[%s2651_s3 + $0xc8] sm:$0xff] }
 0x2ec   :  { %406 = vmatpush.msra.mxu1 %v2210_v26 }
 0x2ed   :  { %570 = vmatpush.msra.mxu0 %v545_v14 }
 0x2ee   :  { %407 = vmatpush.msra.mxu1 %v2216_v27 }
 0x2ef   :  { %571 = vmatpush.msra.mxu0 %v544_v15 }
 0x2f0   :  { %408 = vmatpush.msra.mxu1 %v2222_v63 }
 0x2f1   :  { %572 = vmatpush.msra.mxu0 %v543_v17 }
 0x2f2   :  { %409 = vmatpush.msra.mxu1 %v2228_v12 }
 0x2f3   :  { %573 = vmatpush.msra.mxu0 %v542_v29 }
 0x2f4   :  { %605 = vmatpush.msrb.mxu1 %v584_v38 }
 0x2f6   :  { %606 = vmatpush.msrb.mxu1 %v583_v45  ;;  %v581_v45 = vld [vmem:[%s2650_s2 + $0x270] sm:$0xff] }
 0x349   :  { %v385_v14 = vpop.xlane.xlu1 %384 }
 0x34a   :  { %v388_v15 = vsub.f32 %v2020_v37, %v385_v14  ;;  %v582_v37 = vld [vmem:[%s2650_s2 + $0x278] sm:$0xff] }
 0x34b   :  { %607 = vmatpush.msrb.mxu1 %v582_v37 }
 0x34c   :  { %v390_v17 = vmul.f32 1.442695, %v388_v15 }
 0x34d   :  { %608 = vmatpush.msrb.mxu1 %v581_v45 }
 0x34e   :  { %1603 = vpow2.f32 %v390_v17 }
 0x351   :  { %v387_v29 = vpop.xlane.xlu1 %386 }
 0x352   :  { %v389_v30 = vsub.f32 %v2029_v44, %v387_v29 }
 0x354   :  { %v1604_v31 = vpop.eup %1603  ;;  %v392_v32 = vmul.f32 1.442695, %v389_v30 }
 0x355   :  { %410 = vmatmul.f32.vlgmr.msra.gmra.mxu1 %v1604_v31 }
 0x356   :  { %1605 = vpow2.f32 %v392_v32 }
 0x35c   :  { %v1606_v33 = vpop.eup %1605 }
 0x35d   :  { %413 = vmatmul.f32.gmra.mxu1 %v1606_v33 }
 0x3d2   :  { %v411_v44 = vpop.f32.mrf.mxu1 }
 0x3d3   :  { %v417_v30 = vmax.f32 %v411_v44, 1e-30 }
 0x3d5   :  { %1607 = vrcp.f32 %v417_v30 }
 0x3da   :  { %v414_v32 = vpop.f32.mrf.mxu1 }
 0x3db   :  { %v1608_v14 = vpop.eup %1607  ;;  %v418_v15 = vmax.f32 %v414_v32, 1e-30  ;;  %v1660_v32 = vmov 32.0  }
 0x3dc   :  { %v421_v17 = vmul.f32 %v1608_v14, %v417_v30 }
 0x3dd   :  { %1609 = vrcp.f32 %v418_v15 }
 0x3de   :  { %v423_v29 = vsub.f32 2.0, %v421_v17  ;;  %1611 = vrcp.f32 %v1660_v32  ;;  %v677_v32 = vld [vmem:[%s2651_s3] sm:$0xff] }
 0x3e0   :  { %v425_v46 = vmul.f32 %v1608_v14, %v423_v29 }
 0x3e2   :  { %v427_v47 = vmul.f32 %v1604_v31, %v425_v46  ;;  %v1583_v46 = vld [vmem:[%s2651_s3 + $0x24] ss:$0 sm:$0xff] }
 0x3e3   :  { %v1610_v48 = vpop.eup %1609 }
 0x3e4   :  { %v422_v53 = vmul.f32 %v1610_v48, %v418_v15  ;;  %574 = vmatmul.f32.vlgmr.msra.gmra.mxu0 %v427_v47  ;;  %v1612_v14 = vpop.eup %1611 }
 0x3e5   :  { %v627_v15 = vmul.f32 32.0, %v1612_v14  ;;  %vm631_vm3 = vweird.f32 %v1612_v14 }
 0x3e6   :  { %v424_v38 = vsub.f32 2.0, %v422_v53 }
 0x3e7   :  { %v628_v17 = vsub.f32 1.0, %v627_v15 }
 0x3e8   :  { %v426_v41 = vmul.f32 %v1610_v48, %v424_v38 }
 0x3e9   :  { %v629_v29 = vmul.f32 %v1612_v14, %v628_v17 }
 0x3ea   :  { %v428_v19 = vmul.f32 %v1606_v33, %v426_v41 }
 0x3eb   :  { %v630_v38 = vadd.f32 %v1612_v14, %v629_v29  ;;  %v729_v29 = vld [vmem:[%s2650_s2 + $0x308] sm:$0xff] }
 0x3ec   :  { %577 = vmatmul.f32.gmra.mxu0 %v428_v19  ;;  %732 = vmatpush.msrb.mxu2 %v729_v29 }
 0x3ed   :  { %v2254_v45 = vsel %vm631_vm3, %v1612_v14, %v630_v38  ;;  %v728_v38 = vld [vmem:[%s2650_s2 + $0x300] sm:$0xff] }
 0x3ee   :  { %733 = vmatpush.msrb.mxu2 %v728_v38  ;;  %v721_v38 = vld [vmem:[%s2650_s2 + $0x2c8] sm:$0xff] }
 0x461   :  { %v575_v37 = vpop.f32.mrf.mxu0 }
 0x462   :  { %1534 = vmatmul.msk.f32.vlgmr.msrb.gmra.mxu1 %vm134_vm2, %v575_v37 }
 0x469   :  { %v578_v44 = vpop.f32.mrf.mxu0 }
 0x46a   :  { %1535 = vmatmul.msk.f32.gmra.mxu1 %vm134_vm2, %v578_v44 }
 0x4df   :  { %v610_v47 = vpop.f32.mrf.mxu1 }
 0x4e0   :  { %v611_v53 = vadd.f32 %v1583_v46, %v610_v47 }
 0x4e2   :  { %v616_v41 = vadd.f32 %v611_v53, %v1821_v36 }
 0x4e4   :  { %v620_v19 = vsel %vm134_vm2, %v616_v41, 0.0 }
 0x4e5   :  { %621 = vadd.xlane.f32.xlu2 %v620_v19 }
 0x4e7   :  { %v613_v48 = vpop.f32.mrf.mxu1 }
 0x4e8   :  { %v614_v33 = vadd.f32 %v1583_v46, %v613_v48 }
 0x4ea   :  { %v617_v31 = vadd.f32 %v614_v33, %v1827_v40 }
 0x4ec   :  { %v623_v30 = vsel %vm134_vm2, %v617_v31, 0.0 }
 0x4ed   :  { %624 = vadd.xlane.f32.xlu2 %v623_v30  ;;  %v680_v30 = vld [vmem:[%s2651_s3 + $0x18] sm:$0xff] }
 0x4ee   :  { %701 = vmatpush.msra.mxu1 %v680_v30  ;;  %v724_v30 = vld [vmem:[%s2650_s2 + $0x2e0] sm:$0xff] }
 0x558   :  { %v622_v36 = vpop.xlane.xlu2 %621 }
 0x559   :  { %v633_v37 = vmul.f32 %v2254_v45, %v622_v36  ;;  %v727_v36 = vld [vmem:[%s2650_s2 + $0x2f8] sm:$0xff] }
 0x55a   :  { %734 = vmatpush.msrb.mxu2 %v727_v36 }
 0x55b   :  { %v635_v44 = vsub.f32 %v616_v41, %v633_v37  ;;  %v679_v41 = vld [vmem:[%s2651_s3 + $0x10] sm:$0xff] }
 0x55c   :  { %702 = vmatpush.msra.mxu1 %v679_v41 }
 0x55d   :  { %v637_v46 = vmul.f32 %v635_v44, %v635_v44 }
 0x55f   :  { %v639_v40 = vsel %vm134_vm2, %v637_v46, 0.0 }
 0x560   :  { %640 = vadd.xlane.f32.xlu0 %v639_v40  ;;  %v625_v47 = vpop.xlane.xlu2 %624  ;;  %v726_v40 = vld [vmem:[%s2650_s2 + $0x2f0] sm:$0xff] }
 0x561   :  { %v634_v53 = vmul.f32 %v2254_v45, %v625_v47  ;;  %735 = vmatpush.msrb.mxu2 %v726_v40  ;;  %v720_v40 = vld [vmem:[%s2650_s2 + $0x2c0] sm:$0xff] }
 0x563   :  { %v2259_v19 = vsub.f32 %v617_v31, %v634_v53  ;;  %v678_v31 = vld [vmem:[%s2651_s3 + $0x8] sm:$0xff] }
 0x564   :  { %703 = vmatpush.msra.mxu1 %v678_v31  ;;  %v723_v31 = vld [vmem:[%s2650_s2 + $0x2d8] sm:$0xff] }
 0x565   :  { %v638_v48 = vmul.f32 %v2259_v19, %v2259_v19 }
 0x566   :  { %704 = vmatpush.msra.mxu1 %v677_v32 }
 0x567   :  { %v642_v33 = vsel %vm134_vm2, %v638_v48, 0.0  ;;  %v725_v48 = vld [vmem:[%s2650_s2 + $0x2e8] sm:$0xff] }
 0x568   :  { %643 = vadd.xlane.f32.xlu1 %v642_v33  ;;  %736 = vmatpush.msrb.mxu2 %v725_v48 }
 0x56a   :  { %737 = vmatpush.msrb.mxu2 %v724_v30 }
 0x56c   :  { %738 = vmatpush.msrb.mxu2 %v723_v31 }
 0x5d3   :  { %v641_v14 = vpop.xlane.xlu0 %640 }
 0x5d4   :  { %v645_v15 = vmul.f32 %v641_v14, %v2254_v45  ;;  %v722_v14 = vld [vmem:[%s2650_s2 + $0x2d0] sm:$0xff] }
 0x5d5   :  { %739 = vmatpush.msrb.mxu2 %v722_v14  ;;  %v718_v14 = vld [vmem:[%s2650_s2 + $0x2b0] sm:$0xff] }
 0x5d6   :  { %v647_v17 = vadd.f32 1e-05, %v645_v15 }
 0x5d7   :  { %740 = vmatpush.msrb.mxu2 %v721_v38 }
 0x5d8   :  { %1613 = vrsqrt.f32 %v647_v17  ;;  %vm655_vm5 = vweird.f32 %v647_v17 }
 0x5d9   :  { %741 = vmatpush.msrb.mxu2 %v720_v40 }
 0x5db   :  { %v644_v37 = vpop.xlane.xlu1 %643 }
 0x5dc   :  { %v646_v46 = vmul.f32 %v644_v37, %v2254_v45 }
 0x5de   :  { %v1614_v47 = vpop.eup %1613  ;;  %v648_v53 = vadd.f32 1e-05, %v646_v46  ;;  %v1584_v46 = vld [vmem:[%s2651_s3 + $0x26] ss:$0 sm:$0xff] }
 0x5df   :  { %v650_v33 = vmul.f32 %v1614_v47, %v647_v17  ;;  %vm656_vm4 = vweird.f32 %v1614_v47  ;;  %v719_v17 = vld [vmem:[%s2650_s2 + $0x2b8] sm:$0xff] }
 0x5e0   :  { %1615 = vrsqrt.f32 %v648_v53  ;;  %vm657_vm6 = vmor %vm655_vm5, %vm656_vm4  ;;  %742 = vmatpush.msrb.mxu2 %v719_v17  ;;  %vm665_vm8 = vweird.f32 %v648_v53 }
 0x5e1   :  { %v651_v41 = vmul.f32 %v1614_v47, %v650_v33 }
 0x5e2   :  { %743 = vmatpush.msrb.mxu2 %v718_v14  ;;  %v1587_v14 = vld [vmem:[%s2651_s3 + $0x25] ss:$0 sm:$0xff] }
 0x5e3   :  { %v652_v32 = vmul.f32 0.5, %v651_v41  ;;  %v1585_v41 = vld [vmem:[%s2651_s3 + $0x27] ss:$0 sm:$0xff] }
 0x5e5   :  { %v653_v15 = vsub.f32 1.5, %v652_v32 }
 0x5e6   :  { %v1616_v29 = vpop.eup %1615 }
 0x5e7   :  { %v654_v36 = vmul.f32 %v1614_v47, %v653_v15  ;;  %v660_v37 = vmul.f32 %v1616_v29, %v648_v53  ;;  %vm666_vm7 = vweird.f32 %v1616_v29  ;;  %v715_v53 = vld [vmem:[%s2650_s2 + $0x298] sm:$0xff] }
 0x5e8   :  { %vm667_vm9 = vmor %vm665_vm8, %vm666_vm7 }
 0x5e9   :  { %v658_v48 = vsel %vm657_vm6, %v1614_v47, %v654_v36  ;;  %v661_v33 = vmul.f32 %v1616_v29, %v660_v37 }
 0x5ea   :  { %v669_v30 = vmul.f32 %v658_v48, %v635_v44  ;;  %v717_v44 = vld [vmem:[%s2650_s2 + $0x2a8] sm:$0xff] }
 0x5eb   :  { %v662_v31 = vmul.f32 0.5, %v661_v33  ;;  %744 = vmatpush.msrb.mxu2 %v717_v44  ;;  %v716_v33 = vld [vmem:[%s2650_s2 + $0x2a0] sm:$0xff] }
 0x5ec   :  { %v672_v32 = vmul.f32 %v1584_v46, %v669_v30 }
 0x5ed   :  { %v663_v15 = vsub.f32 1.5, %v662_v31  ;;  %745 = vmatpush.msrb.mxu2 %v716_v33 }
 0x5ee   :  { %v675_v47 = vadd.f32 %v1585_v41, %v672_v32 }
 0x5ef   :  { %v664_v38 = vmul.f32 %v1616_v29, %v663_v15  ;;  %746 = vmatpush.msrb.mxu2 %v715_v53 }
 0x5f0   :  { %1536 = vmatmul.msk.f32.vlgmr.msra.gmra.mxu1 %vm134_vm2, %v675_v47 }
 0x5f1   :  { %v668_v36 = vsel %vm667_vm9, %v1616_v29, %v664_v38  ;;  %v714_v29 = vld [vmem:[%s2650_s2 + $0x290] sm:$0xff] }
 0x5f2   :  { %v670_v37 = vmul.f32 %v668_v36, %v2259_v19  ;;  %747 = vmatpush.msrb.mxu2 %v714_v29  ;;  %v1586_v19 = vld [vmem:[%s2651_s3 + $0x20] ss:$0 sm:$0xff] }
 0x5f4   :  { %v673_v40 = vmul.f32 %v1584_v46, %v670_v37 }
 0x5f6   :  { %v676_v48 = vadd.f32 %v1585_v41, %v673_v40 }
 0x5f8   :  { %1537 = vmatmul.msk.f32.gmra.mxu1 %vm134_vm2, %v676_v48 }
 0x66d   :  { %v706_v46 = vpop.f32.mrf.mxu1 }
 0x66e   :  { %v707_v30 = vadd.f32 %v1586_v19, %v706_v46 }
 0x670   :  { %v712_v41 = vmax.f32 %v707_v30, 0.0 }
 0x672   :  { %748 = vmatmul.f32.vlgmr.msrb.gmra.mxu2 %v712_v41 }
 0x675   :  { %v709_v17 = vpop.f32.mrf.mxu1 }
 0x676   :  { %v710_v31 = vadd.f32 %v1586_v19, %v709_v17 }
 0x678   :  { %v713_v32 = vmax.f32 %v710_v31, 0.0 }
 0x67a   :  { %751 = vmatmul.f32.gmra.mxu2 %v713_v32 }
 0x6f5   :  { %v749_v15 = vpop.f32.mrf.mxu2 }
 0x6f6   :  { %v750_v44 = vadd.f32 %v1587_v14, %v749_v15  ;;  %v847_v15 = vld [vmem:[%s2650_s2 + $0x348] sm:$0xff] }
 0x6f7   :  { %862 = vmatpush.msrb.mxu1 %v847_v15 }
 0x6f8   :  { %v755_v38 = vadd.f32 %v750_v44, %v675_v47  ;;  %v811_v44 = vld [vmem:[%s2650_s2 + $0x320] sm:$0xff] }
 0x6fa   :  { %v759_v36 = vsel %vm134_vm2, %v755_v38, 0.0 }
 0x6fb   :  { %760 = vadd.xlane.f32.xlu2 %v759_v36  ;;  %v810_v36 = vld [vmem:[%s2650_s2 + $0x318] sm:$0xff] }
 0x6fd   :  { %v752_v37 = vpop.f32.mrf.mxu2 }
 0x6fe   :  { %v753_v40 = vadd.f32 %v1587_v14, %v752_v37  ;;  %v812_v14 = vld [vmem:[%s2650_s2 + $0x328] sm:$0xff]  ;;  %v845_v37 = vld [vmem:[%s2650_s2 + $0x338] sm:$0xff] }
 0x6ff   :  { %833 = vmatpush.msrb.mxu0 %v812_v14 }
 0x700   :  { %v756_v33 = vadd.f32 %v753_v40, %v676_v48  ;;  %v809_v40 = vld [vmem:[%s2650_s2 + $0x310] sm:$0xff] }
 0x701   :  { %834 = vmatpush.msrb.mxu0 %v811_v44 }
 0x702   :  { %v762_v53 = vsel %vm134_vm2, %v756_v33, 0.0 }
 0x703   :  { %763 = vadd.xlane.f32.xlu1 %v762_v53  ;;  %835 = vmatpush.msrb.mxu0 %v810_v36 }
 0x705   :  { %836 = vmatpush.msrb.mxu0 %v809_v40 }
 0x76e   :  { %v761_v29 = vpop.xlane.xlu2 %760 }
 0x76f   :  { %v765_v19 = vmul.f32 %v761_v29, %v2254_v45 }
 0x771   :  { %v767_v46 = vsub.f32 %v755_v38, %v765_v19  ;;  %v846_v38 = vld [vmem:[%s2650_s2 + $0x340] sm:$0xff] }
 0x772   :  { %863 = vmatpush.msrb.mxu1 %v846_v38 }
 0x773   :  { %v769_v30 = vmul.f32 %v767_v46, %v767_v46 }
 0x774   :  { %864 = vmatpush.msrb.mxu1 %v845_v37 }
 0x775   :  { %v771_v41 = vsel %vm134_vm2, %v769_v30, 0.0  ;;  %v876_v30 = vld [vmem:[%s2650_s2 + $0x368] sm:$0xff] }
 0x776   :  { %v764_v17 = vpop.xlane.xlu1 %763  ;;  %772 = vadd.xlane.f32.xlu2 %v771_v41  ;;  %v875_v41 = vld [vmem:[%s2650_s2 + $0x360] sm:$0xff]  ;;  %891 = vmatpush.msra.mxu0 %v876_v30 }
 0x777   :  { %v766_v47 = vmul.f32 %v764_v17, %v2254_v45 }
 0x778   :  { %892 = vmatpush.msra.mxu0 %v875_v41  ;;  %v1589_v41 = vld [vmem:[%s2651_s3 + $0x29] ss:$0 sm:$0xff] }
 0x779   :  { %v2346_v31 = vsub.f32 %v756_v33, %v766_v47  ;;  %v844_v33 = vld [vmem:[%s2650_s2 + $0x330] sm:$0xff] }
 0x77a   :  { %865 = vmatpush.msrb.mxu1 %v844_v33  ;;  %v873_v47 = vld [vmem:[%s2650_s2 + $0x350] sm:$0xff]  ;;  %v1588_v33 = vld [vmem:[%s2651_s3 + $0x28] ss:$0 sm:$0xff] }
 0x77b   :  { %v770_v32 = vmul.f32 %v2346_v31, %v2346_v31 }
 0x77c   :  { %960 = vmatpush.msra.mxu1 %v1843_v42  ;;  %v874_v42 = vld [vmem:[%s2650_s2 + $0x358] sm:$0xff] }
 0x77d   :  { %v774_v48 = vsel %vm134_vm2, %v770_v32, 0.0  ;;  %893 = vmatpush.msra.mxu0 %v874_v42 }
 0x77e   :  { %775 = vadd.xlane.f32.xlu1 %v774_v48  ;;  %961 = vmatpush.msra.mxu1 %v1848_v43 }
 0x77f   :  { %894 = vmatpush.msra.mxu0 %v873_v47 }
 0x7e9   :  { %v773_v53 = vpop.xlane.xlu2 %772 }
 0x7ea   :  { %v777_v29 = vmul.f32 %v773_v53, %v2254_v45 }
 0x7ec   :  { %v779_v19 = vadd.f32 1e-05, %v777_v29 }
 0x7ee   :  { %1617 = vrsqrt.f32 %v779_v19  ;;  %vm787_vm11 = vweird.f32 %v779_v19 }
 0x7f1   :  { %v776_v17 = vpop.xlane.xlu1 %775 }
 0x7f2   :  { %v778_v43 = vmul.f32 %v776_v17, %v2254_v45 }
 0x7f4   :  { %v1618_v32 = vpop.eup %1617  ;;  %v780_v48 = vadd.f32 1e-05, %v778_v43 }
 0x7f5   :  { %v782_v14 = vmul.f32 %v1618_v32, %v779_v19  ;;  %vm788_vm10 = vweird.f32 %v1618_v32 }
 0x7f6   :  { %1619 = vrsqrt.f32 %v780_v48  ;;  %vm789_vm12 = vmor %vm787_vm11, %vm788_vm10  ;;  %vm797_vm14 = vweird.f32 %v780_v48 }
 0x7f7   :  { %v783_v15 = vmul.f32 %v1618_v32, %v782_v14 }
 0x7f9   :  { %v784_v44 = vmul.f32 0.5, %v783_v15 }
 0x7fb   :  { %v785_v38 = vsub.f32 1.5, %v784_v44 }
 0x7fc   :  { %v1620_v36 = vpop.eup %1619 }
 0x7fd   :  { %v786_v37 = vmul.f32 %v1618_v32, %v785_v38  ;;  %v792_v40 = vmul.f32 %v1620_v36, %v780_v48  ;;  %vm798_vm13 = vweird.f32 %v1620_v36  ;;  %v1591_v48 = vld [vmem:[%s2651_s3 + $0x52] ss:$0 sm:$0xff] }
 0x7fe   :  { %vm799_vm15 = vmor %vm797_vm14, %vm798_vm13 }
 0x7ff   :  { %v790_v53 = vsel %vm789_vm12, %v1618_v32, %v786_v37  ;;  %v793_v29 = vmul.f32 %v1620_v36, %v792_v40 }
 0x800   :  { %v801_v30 = vmul.f32 %v790_v53, %v767_v46  ;;  %v1592_v53 = vld [vmem:[%s2651_s3 + $0x53] ss:$0 sm:$0xff] }
 0x801   :  { %v794_v42 = vmul.f32 0.5, %v793_v29 }
 0x802   :  { %v804_v17 = vmul.f32 %v1588_v33, %v801_v30 }
 0x803   :  { %v795_v43 = vsub.f32 1.5, %v794_v42 }
 0x804   :  { %v2397_v47 = vadd.f32 %v1589_v41, %v804_v17 }
 0x805   :  { %v796_v19 = vmul.f32 %v1620_v36, %v795_v43  ;;  %v2677_v43 = vld [vmem:[#allocation6_spill] sm:$0xff] }
 0x806   :  { %1538 = vmatmul.msk.f32.vlgmr.msrb.gmra.mxu0 %vm134_vm2, %v2397_v47  ;;  %1540 = vmatmul.msk.f32.vlgmr.msrb.gmra.mxu1 %vm134_vm2, %v2397_v47 }
 0x807   :  { %v800_v46 = vsel %vm799_vm15, %v1620_v36, %v796_v19  ;;  %v2678_v19 = vld [vmem:[#allocation7_spill] sm:$0xff] }
 0x808   :  { %v802_v32 = vmul.f32 %v800_v46, %v2346_v31 }
 0x80a   :  { %v805_v14 = vmul.f32 %v1588_v33, %v802_v32  ;;  %v2679_v32 = vld [vmem:[#allocation8_spill] sm:$0xff] }
 0x80c   :  { %v2404_v15 = vadd.f32 %v1589_v41, %v805_v14 }
 0x80e   :  { %1539 = vmatmul.msk.f32.gmra.mxu0 %vm134_vm2, %v2404_v15  ;;  %1541 = vmatmul.msk.f32.gmra.mxu1 %vm134_vm2, %v2404_v15 }
 0x816   :  { %1542 = vmatmul.msk.f32.vlgmr.msra.gmra.mxu0 %vm134_vm2, %v2397_v47 }
 0x81e   :  { %1543 = vmatmul.msk.f32.gmra.mxu0 %vm134_vm2, %v2404_v15 }
 0x883   :  { %v838_v31 = vpop.f32.mrf.mxu0  ;;  %v867_v44 = vpop.f32.mrf.mxu1 }
 0x884   :  { %v868_v38 = vadd.f32 %v1591_v48, %v867_v44 }
 0x886   :  { %902 = vxpose.xlu2.b32.start [1/2] (short) (narrow) %v868_v38, 32 }
 0x88b   :  { %v841_v36 = vpop.f32.mrf.mxu0  ;;  %v870_v37 = vpop.f32.mrf.mxu1 }
 0x88c   :  { %v871_v40 = vadd.f32 %v1591_v48, %v870_v37  ;;  %v2680_v48 = vld [vmem:[#allocation9_spill] sm:$0xff] }
 0x88e   :  { %903 = vxpose.xlu2.b32.end [2/2] (short) (narrow) %v871_v40, 32  ;;  %v2685_v40 = vld [vmem:[#allocation14_spill] sm:$0xff] }
 0x893   :  { %v896_v33 = vpop.f32.mrf.mxu0 }
 0x894   :  { %v897_v41 = vadd.f32 %v1592_v53, %v896_v33 }
 0x89b   :  { %v899_v29 = vpop.f32.mrf.mxu0 }
 0x89c   :  { %v900_v30 = vadd.f32 %v1592_v53, %v899_v29  ;;  %v2686_v53 = vld [vmem:[#allocation15_spill] sm:$0xff] }
 0x89e   :  { %1067 = vmatpush.msra.mxu2 %v900_v30  ;;  %v2687_v30 = vld [vmem:[#allocation16_spill] sm:$0xff] }
 0x8a0   :  { %1068 = vmatpush.msra.mxu2 %v897_v41 }
 0x8a1   :  { %1550 = vmatmul.msk.f32.vlgmr.msra.gmra.mxu2 %vm94_vm0, %v1858_v54 }
 0x8a9   :  { %1551 = vmatmul.msk.f32.gmra.mxu2 %vm94_vm0, %v1869_v59 }
 0x8b1   :  { %1552 = vmatmul.msk.f32.gmra.mxu2 %vm94_vm0, %v1876_v60 }
 0x8b9   :  { %1553 = vmatmul.msk.f32.gmra.mxu2 %vm94_vm0, %v1883_v61 }
 0x8c1   :  { %1554 = vmatmul.msk.f32.gmra.mxu2 %vm94_vm0, %v1890_v62 }
 0x8c9   :  { %1555 = vmatmul.msk.f32.gmra.mxu2 %vm94_vm0, %v1897_v0 }
 0x8d1   :  { %1556 = vmatmul.msk.f32.gmra.mxu2 %vm94_vm0, %v1904_v2 }
 0x8d9   :  { %1557 = vmatmul.msk.f32.gmra.mxu2 %vm94_vm0, %v1911_v4 }
 0x8e1   :  { %1558 = vmatmul.msk.f32.gmra.mxu2 %vm94_vm0, %v1934_v10 }
 0x8e9   :  { %1559 = vmatmul.msk.f32.gmra.mxu2 %vm94_vm0, %v1953_v18 }
 0x8f1   :  { %1560 = vmatmul.msk.f32.gmra.mxu2 %vm94_vm0, %v1961_v20  ;;  %v1590_v20 = vld [vmem:[%s2651_s3 + $0x51] ss:$0 sm:$0xff] }
 0x8f9   :  { %1561 = vmatmul.msk.f32.gmra.mxu2 %vm94_vm0, %v1968_v21 }
 0x901   :  { %1562 = vmatmul.msk.f32.gmra.mxu2 %vm94_vm0, %v1975_v22 }
 0x909   :  { %1563 = vmatmul.msk.f32.gmra.mxu2 %vm94_vm0, %v1982_v23  ;;  %v839_v23 = vadd.f32 %v1590_v20, %v838_v31 }
 0x911   :  { %1564 = vmatmul.msk.f32.gmra.mxu2 %vm94_vm0, %v1989_v24 }
 0x919   :  { %1565 = vmatmul.msk.f32.gmra.mxu2 %vm94_vm0, %v1996_v25 }
 0x91f   :  { %v918_v54 = vpop.trf.xlu2 }
 0x920   :  { %1544 = vmatmul.msk.f32.vlgmr.msra.gmra.mxu1 %vm94_vm0, %v918_v54  ;;  %v2688_v54 = vld [vmem:[#allocation17_spill] sm:$0xff] }
 0x927   :  { %v919_v59 = vpop.trf.xlu2 }
 0x928   :  { %1545 = vmatmul.msk.f32.gmra.mxu1 %vm94_vm0, %v919_v59 }
 0x92f   :  { %v920_v60 = vpop.trf.xlu2 }
 0x930   :  { %1546 = vmatmul.msk.f32.gmra.mxu1 %vm94_vm0, %v920_v60 }
 0x937   :  { %v921_v61 = vpop.trf.xlu2 }
 0x938   :  { %1547 = vmatmul.msk.f32.gmra.mxu1 %vm94_vm0, %v921_v61 }
 0x99d   :  { %v963_v62 = vpop.f32.mrf.mxu1 }
 0x99e   :  { %v975_v22 = vmul.f32 %v963_v62, %v1943_v13 }
 0x9a5   :  { %v966_v0 = vpop.f32.mrf.mxu1 }
 0x9a6   :  { %v976_v21 = vmul.f32 %v966_v0, %v1929_v9 }
 0x9ad   :  { %v969_v2 = vpop.f32.mrf.mxu1 }
 0x9ae   :  { %v977_v18 = vmul.f32 %v969_v2, %v1923_v6  ;;  %v1070_v6 = vpop.f32.mrf.mxu2 }
 0x9af   :  { %v1118_v59 = vmul.f32 %v1070_v6, %v2688_v54 }
 0x9b5   :  { %v972_v4 = vpop.f32.mrf.mxu1 }
 0x9b6   :  { %v978_v10 = vmul.f32 %v972_v4, %v1918_v5  ;;  %v842_v5 = vadd.f32 %v1590_v20, %v841_v36  ;;  %v1073_v9 = vpop.f32.mrf.mxu2  ;;  %v2684_v36 = vld [vmem:[#allocation13_spill] sm:$0xff] }
 0x9b7   :  { %v1119_v41 = vmul.f32 %v1073_v9, %v2687_v30  ;;  %v1160_v20 = vld [vmem:[%s2650_s2 + $0x388] sm:$0xff]  ;;  %v1295_v30 = vld [vmem:[%s2650_s2 + $0x3f0] sm:$0xff] }
 0x9b8   :  { %997 = vmatpush.msrb.mxu0 %v978_v10 }
 0x9ba   :  { %998 = vmatpush.msrb.mxu0 %v977_v18 }
 0x9bc   :  { %999 = vmatpush.msrb.mxu0 %v976_v21  ;;  %v1159_v21 = vld [vmem:[%s2650_s2 + $0x380] sm:$0xff] }
 0x9be   :  { %1000 = vmatpush.msrb.mxu0 %v975_v22  ;;  %v1076_v13 = vpop.f32.mrf.mxu2  ;;  %v1158_v22 = vld [vmem:[%s2650_s2 + $0x378] sm:$0xff] }
 0x9bf   :  { %1548 = vmatmul.msk.f32.vlgmr.msrb.gmra.mxu0 %vm134_vm2, %v839_v23  ;;  %v1120_v29 = vmul.f32 %v1076_v13, %v2686_v53 }
 0x9c0   :  { %1018 = vmatpush.msra.mxu0 %v2035_v49 }
 0x9c2   :  { %1019 = vmatpush.msra.mxu0 %v2041_v50 }
 0x9c4   :  { %1020 = vmatpush.msra.mxu0 %v2047_v51 }
 0x9c6   :  { %1021 = vmatpush.msra.mxu0 %v2053_v52  ;;  %v1079_v24 = vpop.f32.mrf.mxu2 }
 0x9c7   :  { %1549 = vmatmul.msk.f32.gmra.mxu0 %vm134_vm2, %v842_v5  ;;  %v1121_v33 = vmul.f32 %v1079_v24, %v2685_v40  ;;  %v1297_v40 = vld [vmem:[%s2650_s2 + $0x400] sm:$0xff] }
 0x9c8   :  { %1022 = vmatpush.msra.mxu0 %v2059_v55 }
 0x9ca   :  { %1023 = vmatpush.msra.mxu0 %v2065_v56 }
 0x9cc   :  { %1024 = vmatpush.msra.mxu0 %v2071_v57 }
 0x9ce   :  { %1025 = vmatpush.msra.mxu0 %v2077_v58  ;;  %v1082_v25 = vpop.f32.mrf.mxu2 }
 0x9cf   :  { %v1122_v37 = vmul.f32 %v1082_v25, %v2684_v36 }
 0x9d0   :  { %1026 = vmatpush.msra.mxu0 %v2083_v1 }
 0x9d2   :  { %1027 = vmatpush.msra.mxu0 %v2089_v3 }
 0x9d4   :  { %1028 = vmatpush.msra.mxu0 %v2198_v35 }
 0x9d6   :  { %1029 = vmatpush.msra.mxu0 %v2204_v28  ;;  %v1085_v49 = vpop.f32.mrf.mxu2 }
 0x9d8   :  { %1030 = vmatpush.msra.mxu0 %v2210_v26 }
 0x9da   :  { %1031 = vmatpush.msra.mxu0 %v2216_v27 }
 0x9dc   :  { %1032 = vmatpush.msra.mxu0 %v2222_v63 }
 0x9de   :  { %1033 = vmatpush.msra.mxu0 %v2228_v12  ;;  %v1088_v50 = vpop.f32.mrf.mxu2 }
 0x9e0   :  { %1181 = vmatpush.msrb.mxu0 %v1160_v20  ;;  %v1290_v20 = vld [vmem:[%s2650_s2 + $0x3c8] sm:$0xff] }
 0x9e2   :  { %1182 = vmatpush.msrb.mxu0 %v1159_v21 }
 0x9e4   :  { %1183 = vmatpush.msrb.mxu0 %v1158_v22 }
 0x9e6   :  { %v1091_v51 = vpop.f32.mrf.mxu2 }
 0x9ee   :  { %v1094_v56 = vpop.f32.mrf.mxu2 }
 0x9ef   :  { %v1126_v31 = vmul.f32 %v1094_v56, %v2680_v48 }
 0x9f6   :  { %v1097_v1 = vpop.f32.mrf.mxu2 }
 0x9f7   :  { %v1127_v14 = vmul.f32 %v1097_v1, %v2679_v32 }
 0x9fe   :  { %v1100_v3 = vpop.f32.mrf.mxu2 }
 0x9ff   :  { %v1128_v46 = vmul.f32 %v1100_v3, %v2678_v19 }
 0xa06   :  { %v1103_v35 = vpop.f32.mrf.mxu2 }
 0xa0e   :  { %v1106_v28 = vpop.f32.mrf.mxu2 }
 0xa16   :  { %v1109_v26 = vpop.f32.mrf.mxu2 }
 0xa17   :  { %v1131_v17 = vmul.f32 %v1109_v26, %v2105_v11  ;;  %v2682_v11 = vld [vmem:[#allocation11_spill] sm:$0xff] }
 0xa18   :  { %v1124_v44 = vmul.f32 %v1088_v50, %v2682_v11  ;;  %v1247_v11 = vld [vmem:[%s2651_s3 + $0x38] sm:$0xff] }
 0xa1e   :  { %v1112_v27 = vpop.f32.mrf.mxu2 }
 0xa1f   :  { %v1132_v12 = vmul.f32 %v1112_v27, %v2095_v7  ;;  %v2681_v7 = vld [vmem:[#allocation10_spill] sm:$0xff] }
 0xa26   :  { %v1115_v63 = vpop.f32.mrf.mxu2 }
 0xa27   :  { %v1133_v42 = vmul.f32 %v1115_v63, %v2100_v8  ;;  %v1125_v8 = vmul.f32 %v1091_v51, %v2681_v7  ;;  %v1249_v7 = vld [vmem:[%s2651_s3 + $0x48] sm:$0xff] }
 0xa29   :  { %1134 = vmatpush.msrb.mxu1 %v1133_v42 }
 0xa2b   :  { %1135 = vmatpush.msrb.mxu1 %v1132_v12 }
 0xa2d   :  { %1136 = vmatpush.msrb.mxu1 %v1131_v17 }
 0xa3c   :  { %v1002_v52 = vpop.f32.mrf.mxu0 }
 0xa3d   :  { %v1003_v55 = vadd.f32 %v1002_v52, %v2017_v34  ;;  %v1130_v34 = vmul.f32 %v1106_v28, %v2112_v16  ;;  %v2683_v16 = vld [vmem:[#allocation12_spill] sm:$0xff] }
 0xa3e   :  { %v1123_v38 = vmul.f32 %v1085_v49, %v2683_v16 }
 0xa3f   :  { %1008 = vmax.xlane.f32.xlu1 %v1003_v55  ;;  %1137 = vmatpush.msrb.mxu1 %v1130_v34 }
 0xa44   :  { %v1005_v57 = vpop.f32.mrf.mxu0 }
 0xa45   :  { %v1006_v58 = vadd.f32 %v1005_v57, %v2026_v39  ;;  %v1129_v39 = vmul.f32 %v1103_v35, %v2677_v43  ;;  %v1593_v35 = vld [vmem:[%s2651_s3 + $0x54] ss:$0 sm:$0xff] }
 0xa47   :  { %1010 = vmax.xlane.f32.xlu1 %v1006_v58  ;;  %1138 = vmatpush.msrb.mxu1 %v1129_v39 }
 0xa49   :  { %1139 = vmatpush.msrb.mxu1 %v1128_v46 }
 0xa4b   :  { %1140 = vmatpush.msrb.mxu1 %v1127_v14 }
 0xa4d   :  { %1141 = vmatpush.msrb.mxu1 %v1126_v31 }
 0xa4f   :  { %1142 = vmatpush.msrb.mxu1 %v1125_v8  ;;  %v1248_v8 = vld [vmem:[%s2651_s3 + $0x40] sm:$0xff] }
 0xa51   :  { %1143 = vmatpush.msrb.mxu1 %v1124_v44  ;;  %v1246_v44 = vld [vmem:[%s2651_s3 + $0x30] sm:$0xff] }
 0xa53   :  { %1144 = vmatpush.msrb.mxu1 %v1123_v38 }
 0xa55   :  { %1145 = vmatpush.msrb.mxu1 %v1122_v37  ;;  %v1298_v37 = vld [vmem:[%s2650_s2 + $0x408] sm:$0xff] }
 0xa56   :  { %1301 = vmatpush.msrb.mxu3 %v1298_v37 }
 0xa57   :  { %1146 = vmatpush.msrb.mxu1 %v1121_v33  ;;  %v1296_v33 = vld [vmem:[%s2650_s2 + $0x3f8] sm:$0xff] }
 0xa58   :  { %1302 = vmatpush.msrb.mxu3 %v1297_v40 }
 0xa59   :  { %1147 = vmatpush.msrb.mxu1 %v1120_v29 }
 0xa5a   :  { %1303 = vmatpush.msrb.mxu3 %v1296_v33 }
 0xa5b   :  { %1148 = vmatpush.msrb.mxu1 %v1119_v41 }
 0xa5c   :  { %1304 = vmatpush.msrb.mxu3 %v1295_v30  ;;  %v1390_v30 = vld [vmem:[%s2651_s3 + $0x78] sm:$0xff] }
 0xa5d   :  { %1149 = vmatpush.msrb.mxu1 %v1118_v59  ;;  %v1294_v59 = vld [vmem:[%s2650_s2 + $0x3e8] sm:$0xff] }
 0xa5e   :  { %1305 = vmatpush.msrb.mxu3 %v1294_v59 }
 0xa5f   :  { %1270 = vmatpush.msra.mxu1 %v1249_v7 }
 0xa61   :  { %1271 = vmatpush.msra.mxu1 %v1248_v8 }
 0xa63   :  { %1272 = vmatpush.msra.mxu1 %v1247_v11 }
 0xa65   :  { %1273 = vmatpush.msra.mxu1 %v1246_v44 }
 0xab2   :  { %v1009_v60 = vpop.xlane.xlu1 %1008 }
 0xab3   :  { %v1012_v61 = vsub.f32 %v1003_v55, %v1009_v60 }
 0xab5   :  { %v1014_v62 = vmul.f32 1.442695, %v1012_v61  ;;  %v1293_v61 = vld [vmem:[%s2650_s2 + $0x3e0] sm:$0xff] }
 0xab6   :  { %1306 = vmatpush.msrb.mxu3 %v1293_v61 }
 0xab7   :  { %1621 = vpow2.f32 %v1014_v62 }
 0xaba   :  { %v1011_v0 = vpop.xlane.xlu1 %1010 }
 0xabb   :  { %v1013_v2 = vsub.f32 %v1006_v58, %v1011_v0  ;;  %v1157_v58 = vld [vmem:[%s2650_s2 + $0x370] sm:$0xff]  ;;  %v1292_v0 = vld [vmem:[%s2650_s2 + $0x3d8] sm:$0xff] }
 0xabc   :  { %1184 = vmatpush.msrb.mxu0 %v1157_v58  ;;  %1307 = vmatpush.msrb.mxu3 %v1292_v0  ;;  %v1285_v58 = vld [vmem:[%s2650_s2 + $0x3a0] sm:$0xff] }
 0xabd   :  { %v1622_v4 = vpop.eup %1621  ;;  %v1016_v10 = vmul.f32 1.442695, %v1013_v2 }
 0xabe   :  { %1034 = vmatmul.f32.vlgmr.msra.gmra.mxu0 %v1622_v4 }
 0xabf   :  { %1623 = vpow2.f32 %v1016_v10 }
 0xac5   :  { %v1624_v18 = vpop.eup %1623 }
 0xac6   :  { %1037 = vmatmul.f32.gmra.mxu0 %v1624_v18 }
 0xb3b   :  { %v1035_v23 = vpop.f32.mrf.mxu0 }
 0xb3c   :  { %v1041_v5 = vmax.f32 %v1035_v23, 1e-30  ;;  %v1594_v23 = vld [vmem:[%s2651_s3 + $0x56] ss:$0 sm:$0xff] }
 0xb3e   :  { %1625 = vrcp.f32 %v1041_v5 }
 0xb43   :  { %v1038_v6 = vpop.f32.mrf.mxu0 }
 0xb44   :  { %v1626_v9 = vpop.eup %1625  ;;  %v1042_v13 = vmax.f32 %v1038_v6, 1e-30 }
 0xb45   :  { %v1045_v24 = vmul.f32 %v1626_v9, %v1041_v5  ;;  %v1289_v5 = vld [vmem:[%s2650_s2 + $0x3c0] sm:$0xff] }
 0xb46   :  { %1627 = vrcp.f32 %v1042_v13 }
 0xb47   :  { %v1047_v25 = vsub.f32 2.0, %v1045_v24  ;;  %v1595_v24 = vld [vmem:[%s2651_s3 + $0x57] ss:$0 sm:$0xff] }
 0xb49   :  { %v1049_v49 = vmul.f32 %v1626_v9, %v1047_v25  ;;  %v1288_v25 = vld [vmem:[%s2650_s2 + $0x3b8] sm:$0xff] }
 0xb4b   :  { %v1051_v50 = vmul.f32 %v1622_v4, %v1049_v49  ;;  %v1291_v4 = vld [vmem:[%s2650_s2 + $0x3d0] sm:$0xff] }
 0xb4c   :  { %v1628_v51 = vpop.eup %1627  ;;  %1308 = vmatpush.msrb.mxu3 %v1291_v4 }
 0xb4d   :  { %v1046_v52 = vmul.f32 %v1628_v51, %v1042_v13  ;;  %1150 = vmatmul.f32.vlgmr.msrb.gmra.mxu1 %v1051_v50 }
 0xb4e   :  { %1309 = vmatpush.msrb.mxu3 %v1290_v20 }
 0xb4f   :  { %v1048_v55 = vsub.f32 2.0, %v1046_v52 }
 0xb50   :  { %1310 = vmatpush.msrb.mxu3 %v1289_v5 }
 0xb51   :  { %v1050_v56 = vmul.f32 %v1628_v51, %v1048_v55  ;;  %v1287_v51 = vld [vmem:[%s2650_s2 + $0x3b0] sm:$0xff] }
 0xb52   :  { %1311 = vmatpush.msrb.mxu3 %v1288_v25 }
 0xb53   :  { %v1052_v57 = vmul.f32 %v1624_v18, %v1050_v56  ;;  %v1286_v56 = vld [vmem:[%s2650_s2 + $0x3a8] sm:$0xff] }
 0xb54   :  { %1312 = vmatpush.msrb.mxu3 %v1287_v51 }
 0xb55   :  { %1153 = vmatmul.f32.gmra.mxu1 %v1052_v57 }
 0xb56   :  { %1313 = vmatpush.msrb.mxu3 %v1286_v56 }
 0xb58   :  { %1314 = vmatpush.msrb.mxu3 %v1285_v58 }
 0xbca   :  { %v1151_v1 = vpop.f32.mrf.mxu1 }
 0xbcb   :  { %1566 = vmatmul.msk.f32.vlgmr.msrb.gmra.mxu0 %vm134_vm2, %v1151_v1 }
 0xbd2   :  { %v1154_v3 = vpop.f32.mrf.mxu1 }
 0xbd3   :  { %1567 = vmatmul.msk.f32.gmra.mxu0 %vm134_vm2, %v1154_v3 }
 0xc48   :  { %v1186_v28 = vpop.f32.mrf.mxu0 }
 0xc49   :  { %v1187_v26 = vadd.f32 %v1593_v35, %v1186_v28 }
 0xc4b   :  { %v1192_v27 = vadd.f32 %v1187_v26, %v2397_v47 }
 0xc4d   :  { %v1196_v63 = vsel %vm134_vm2, %v1192_v27, 0.0 }
 0xc4e   :  { %1197 = vadd.xlane.f32.xlu1 %v1196_v63  ;;  %v1596_v63 = vld [vmem:[%s2651_s3 + $0x50] ss:$0 sm:$0xff] }
 0xc50   :  { %v1189_v12 = vpop.f32.mrf.mxu0 }
 0xc51   :  { %v1190_v42 = vadd.f32 %v1593_v35, %v1189_v12  ;;  %v1284_v35 = vld [vmem:[%s2650_s2 + $0x398] sm:$0xff] }
 0xc52   :  { %1315 = vmatpush.msrb.mxu3 %v1284_v35 }
 0xc53   :  { %v1193_v17 = vadd.f32 %v1190_v42, %v2404_v15 }
 0xc55   :  { %v1199_v34 = vsel %vm134_vm2, %v1193_v17, 0.0 }
 0xc56   :  { %1200 = vadd.xlane.f32.xlu1 %v1199_v34 }
 0xcc1   :  { %v1198_v43 = vpop.xlane.xlu1 %1197 }
 0xcc2   :  { %v1202_v39 = vmul.f32 %v1198_v43, %v2254_v45 }
 0xcc4   :  { %v1204_v19 = vsub.f32 %v1192_v27, %v1202_v39  ;;  %v1283_v27 = vld [vmem:[%s2650_s2 + $0x390] sm:$0xff] }
 0xcc5   :  { %1316 = vmatpush.msrb.mxu3 %v1283_v27 }
 0xcc6   :  { %v1206_v46 = vmul.f32 %v1204_v19, %v1204_v19 }
 0xcc8   :  { %v1208_v32 = vsel %vm134_vm2, %v1206_v46, 0.0 }
 0xcc9   :  { %1209 = vadd.xlane.f32.xlu1 %v1208_v32  ;;  %v1201_v14 = vpop.xlane.xlu1 %1200 }
 0xcca   :  { %v1203_v47 = vmul.f32 %v1201_v14, %v2254_v45 }
 0xccc   :  { %v2523_v48 = vsub.f32 %v1193_v17, %v1203_v47 }
 0xcce   :  { %v1207_v31 = vmul.f32 %v2523_v48, %v2523_v48 }
 0xcd0   :  { %v1211_v15 = vsel %vm134_vm2, %v1207_v31, 0.0 }
 0xcd1   :  { %1212 = vadd.xlane.f32.xlu1 %v1211_v15 }
 0xd3c   :  { %v1210_v16 = vpop.xlane.xlu1 %1209 }
 0xd3d   :  { %v1214_v38 = vmul.f32 %v1210_v16, %v2254_v45 }
 0xd3f   :  { %v1216_v36 = vadd.f32 1e-05, %v1214_v38 }
 0xd41   :  { %1629 = vrsqrt.f32 %v1216_v36  ;;  %vm1224_vm1 = vweird.f32 %v1216_v36 }
 0xd44   :  { %v1213_v53 = vpop.xlane.xlu1 %1212 }
 0xd45   :  { %v1215_v29 = vmul.f32 %v1213_v53, %v2254_v45 }
 0xd47   :  { %v1630_v41 = vpop.eup %1629  ;;  %v1217_v54 = vadd.f32 1e-05, %v1215_v29  ;;  %v1391_v29 = vld [vmem:[%s2651_s3 + $0x80] sm:$0xff] }
 0xd48   :  { %v1219_v60 = vmul.f32 %v1630_v41, %v1216_v36  ;;  %vm1225_vm0 = vweird.f32 %v1630_v41  ;;  %1412 = vmatpush.msra.mxu0 %v1391_v29 }
 0xd49   :  { %1631 = vrsqrt.f32 %v1217_v54  ;;  %vm1226_vm3 = vmor %vm1224_vm1, %vm1225_vm0  ;;  %vm1234_vm5 = vweird.f32 %v1217_v54 }
 0xd4a   :  { %v1220_v62 = vmul.f32 %v1630_v41, %v1219_v60  ;;  %1413 = vmatpush.msra.mxu0 %v1390_v30 }
 0xd4c   :  { %v1221_v2 = vmul.f32 0.5, %v1220_v62 }
 0xd4e   :  { %v1222_v10 = vsub.f32 1.5, %v1221_v2 }
 0xd4f   :  { %v1632_v18 = vpop.eup %1631 }
 0xd50   :  { %v1223_v21 = vmul.f32 %v1630_v41, %v1222_v10  ;;  %v1229_v22 = vmul.f32 %v1632_v18, %v1217_v54  ;;  %vm1235_vm4 = vweird.f32 %v1632_v18  ;;  %v1388_v54 = vld [vmem:[%s2651_s3 + $0x68] sm:$0xff] }
 0xd51   :  { %vm1236_vm6 = vmor %vm1234_vm5, %vm1235_vm4 }
 0xd52   :  { %v1227_v6 = vsel %vm1226_vm3, %v1630_v41, %v1223_v21  ;;  %v1230_v9 = vmul.f32 %v1632_v18, %v1229_v22  ;;  %v1389_v41 = vld [vmem:[%s2651_s3 + $0x70] sm:$0xff] }
 0xd53   :  { %v1238_v13 = vmul.f32 %v1227_v6, %v1204_v19  ;;  %v1597_v19 = vld [vmem:[%s2651_s3 + $0x55] ss:$0 sm:$0xff]  ;;  %1414 = vmatpush.msra.mxu0 %v1389_v41  ;;  %v1598_v6 = vld [vmem:[%s2651_s3 + $0x58] ss:$0 sm:$0xff] }
 0xd54   :  { %v1231_v49 = vmul.f32 0.5, %v1230_v9 }
 0xd55   :  { %v1241_v50 = vmul.f32 %v1594_v23, %v1238_v13  ;;  %1415 = vmatpush.msra.mxu0 %v1388_v54 }
 0xd56   :  { %v1232_v52 = vsub.f32 1.5, %v1231_v49 }
 0xd57   :  { %v1244_v55 = vadd.f32 %v1595_v24, %v1241_v50  ;;  %v1600_v50 = vld [vmem:[%s2651_s3 + $0x61] ss:$0 sm:$0xff] }
 0xd58   :  { %v1233_v57 = vmul.f32 %v1632_v18, %v1232_v52 }
 0xd59   :  { %1568 = vmatmul.msk.f32.vlgmr.msra.gmra.mxu1 %vm134_vm2, %v1244_v55 }
 0xd5a   :  { %v1237_v1 = vsel %vm1236_vm6, %v1632_v18, %v1233_v57 }
 0xd5b   :  { %v1239_v3 = vmul.f32 %v1237_v1, %v2523_v48 }
 0xd5d   :  { %v1242_v28 = vmul.f32 %v1594_v23, %v1239_v3 }
 0xd5f   :  { %v1245_v26 = vadd.f32 %v1595_v24, %v1242_v28 }
 0xd61   :  { %1569 = vmatmul.msk.f32.gmra.mxu1 %vm134_vm2, %v1245_v26 }
 0xdd6   :  { %v1275_v12 = vpop.f32.mrf.mxu1 }
 0xdd7   :  { %v1276_v42 = vadd.f32 %v1596_v63, %v1275_v12 }
 0xdd9   :  { %v1281_v17 = vmax.f32 %v1276_v42, 0.0  ;;  %v1602_v42 = vld [vmem:[%s2651_s3 + $0x63] ss:$0 sm:$0xff] }
 0xddb   :  { %1317 = vmatmul.f32.vlgmr.msrb.gmra.mxu3 %v1281_v17 }
 0xdde   :  { %v1278_v34 = vpop.f32.mrf.mxu1 }
 0xddf   :  { %v1279_v43 = vadd.f32 %v1596_v63, %v1278_v34 }
 0xde1   :  { %v1282_v39 = vmax.f32 %v1279_v43, 0.0 }
 0xde3   :  { %1320 = vmatmul.f32.gmra.mxu3 %v1282_v39 }
 0xe5e   :  { %v1318_v46 = vpop.f32.mrf.mxu3 }
 0xe5f   :  { %v1319_v32 = vadd.f32 %v1597_v19, %v1318_v46 }
 0xe61   :  { %v1324_v14 = vadd.f32 %v1319_v32, %v1244_v55  ;;  %v1601_v55 = vld [vmem:[%s2651_s3 + $0x62] ss:$0 sm:$0xff] }
 0xe63   :  { %v1328_v47 = vsel %vm134_vm2, %v1324_v14, 0.0 }
 0xe64   :  { %1329 = vadd.xlane.f32.xlu2 %v1328_v47 }
 0xe66   :  { %v1321_v48 = vpop.f32.mrf.mxu3 }
 0xe67   :  { %v1322_v31 = vadd.f32 %v1597_v19, %v1321_v48 }
 0xe69   :  { %v1325_v15 = vadd.f32 %v1322_v31, %v1245_v26 }
 0xe6b   :  { %v1331_v7 = vsel %vm134_vm2, %v1325_v15, 0.0 }
 0xe6c   :  { %1332 = vadd.xlane.f32.xlu1 %v1331_v7 }
 0xed7   :  { %v1330_v8 = vpop.xlane.xlu2 %1329 }
 0xed8   :  { %v1334_v11 = vmul.f32 %v1330_v8, %v2254_v45 }
 0xeda   :  { %v1336_v44 = vsub.f32 %v1324_v14, %v1334_v11 }
 0xedc   :  { %v1338_v16 = vmul.f32 %v1336_v44, %v1336_v44 }
 0xede   :  { %v1340_v38 = vsel %vm134_vm2, %v1338_v16, 0.0 }
 0xedf   :  { %1341 = vadd.xlane.f32.xlu1 %v1340_v38  ;;  %v1333_v36 = vpop.xlane.xlu1 %1332 }
 0xee0   :  { %v1335_v37 = vmul.f32 %v1333_v36, %v2254_v45 }
 0xee2   :  { %v1337_v40 = vsub.f32 %v1325_v15, %v1335_v37 }
 0xee4   :  { %v1339_v33 = vmul.f32 %v1337_v40, %v1337_v40 }
 0xee6   :  { %v1343_v53 = vsel %vm134_vm2, %v1339_v33, 0.0 }
 0xee7   :  { %1344 = vadd.xlane.f32.xlu1 %v1343_v53 }
 0xf52   :  { %v1342_v59 = vpop.xlane.xlu1 %1341 }
 0xf53   :  { %v1346_v60 = vmul.f32 %v1342_v59, %v2254_v45 }
 0xf55   :  { %v1348_v61 = vadd.f32 1e-05, %v1346_v60 }
 0xf57   :  { %1633 = vrsqrt.f32 %v1348_v61  ;;  %vm1356_vm8 = vweird.f32 %v1348_v61 }
 0xf5a   :  { %v1345_v62 = vpop.xlane.xlu1 %1344 }
 0xf5b   :  { %v1347_v0 = vmul.f32 %v1345_v62, %v2254_v45  ;;  %v1599_v45 = vld [vmem:[%s2651_s3 + $0x59] ss:$0 sm:$0xff] }
 0xf5d   :  { %v1634_v2 = vpop.eup %1633  ;;  %v1349_v4 = vadd.f32 1e-05, %v1347_v0 }
 0xf5e   :  { %v1351_v10 = vmul.f32 %v1634_v2, %v1348_v61  ;;  %vm1357_vm7 = vweird.f32 %v1634_v2 }
 0xf5f   :  { %1635 = vrsqrt.f32 %v1349_v4  ;;  %vm1358_vm9 = vmor %vm1356_vm8, %vm1357_vm7  ;;  %vm1366_vm11 = vweird.f32 %v1349_v4 }
 0xf60   :  { %v1352_v18 = vmul.f32 %v1634_v2, %v1351_v10 }
 0xf62   :  { %v1353_v20 = vmul.f32 0.5, %v1352_v18 }
 0xf64   :  { %v1354_v21 = vsub.f32 1.5, %v1353_v20 }
 0xf65   :  { %v1636_v22 = vpop.eup %1635 }
 0xf66   :  { %v1355_v23 = vmul.f32 %v1634_v2, %v1354_v21  ;;  %v1361_v5 = vmul.f32 %v1636_v22, %v1349_v4  ;;  %vm1367_vm10 = vweird.f32 %v1636_v22 }
 0xf67   :  { %vm1368_vm12 = vmor %vm1366_vm11, %vm1367_vm10 }
 0xf68   :  { %v1359_v9 = vsel %vm1358_vm9, %v1634_v2, %v1355_v23  ;;  %v1362_v13 = vmul.f32 %v1636_v22, %v1361_v5 }
 0xf69   :  { %v1370_v24 = vmul.f32 %v1359_v9, %v1336_v44 }
 0xf6a   :  { %v1363_v25 = vmul.f32 0.5, %v1362_v13 }
 0xf6b   :  { %v1373_v49 = vmul.f32 %v1598_v6, %v1370_v24 }
 0xf6c   :  { %v1364_v51 = vsub.f32 1.5, %v1363_v25 }
 0xf6d   :  { %v1376_v52 = vadd.f32 %v1599_v45, %v1373_v49 }
 0xf6e   :  { %v1365_v56 = vmul.f32 %v1636_v22, %v1364_v51 }
 0xf6f   :  { %v1380_v57 = vmul.f32 %v1600_v50, %v1376_v52 }
 0xf70   :  { %v1369_v58 = vsel %vm1368_vm12, %v1636_v22, %v1365_v56 }
 0xf71   :  { %v1371_v1 = vmul.f32 %v1369_v58, %v1337_v40  ;;  %v1384_v3 = vadd.f32 %v1601_v55, %v1380_v57 }
 0xf73   :  { %v1386_v35 = vmax.f32 %v1384_v3, 0.0  ;;  %v1374_v28 = vmul.f32 %v1598_v6, %v1371_v1 }
 0xf75   :  { %1570 = vmatmul.msk.f32.vlgmr.msra.gmra.mxu0 %vm134_vm2, %v1386_v35  ;;  %v1377_v26 = vadd.f32 %v1599_v45, %v1374_v28 }
 0xf77   :  { %v1381_v27 = vmul.f32 %v1600_v50, %v1377_v26 }
 0xf79   :  { %v1385_v63 = vadd.f32 %v1601_v55, %v1381_v27 }
 0xf7b   :  { %v1387_v12 = vmax.f32 %v1385_v63, 0.0 }
 0xf7d   :  { %1571 = vmatmul.msk.f32.gmra.mxu0 %vm134_vm2, %v1387_v12 }
 0xff2   :  { %v1417_v17 = vpop.f32.mrf.mxu0 }
 0xff3   :  { %v1418_v34 = vadd.f32 %v1602_v42, %v1417_v17 }
 0xff5   :  { %1423 = vmax.xlane.f32.xlu1 %v1418_v34 }
 0xffa   :  { %v1420_v43 = vpop.f32.mrf.mxu0 }
 0xffb   :  { %v1421_v39 = vadd.f32 %v1602_v42, %v1420_v43 }
 0xffd   :  { %1425 = vmax.xlane.f32.xlu1 %v1421_v39 }
0x1068   :  { %v1424_v19 = vpop.xlane.xlu1 %1423 }
0x1069   :  { %v1427_v46 = vsub.f32 %v1418_v34, %v1424_v19 }
0x106b   :  { %v1429_v32 = vmul.f32 1.442695, %v1427_v46 }
0x106d   :  { %1637 = vpow2.f32 %v1429_v32 }
0x1070   :  { %v1426_v14 = vpop.xlane.xlu1 %1425 }
0x1071   :  { %v1428_v47 = vsub.f32 %v1421_v39, %v1426_v14 }
0x1073   :  { %v1638_v48 = vpop.eup %1637  ;;  %v1431_v31 = vmul.f32 1.442695, %v1428_v47 }
0x1074   :  { %1433 = vadd.xlane.f32.xlu1 %v1638_v48 }
0x1075   :  { %1639 = vpow2.f32 %v1431_v31 }
0x107b   :  { %v1640_v15 = vpop.eup %1639 }
0x107c   :  { %1435 = vadd.xlane.f32.xlu1 %v1640_v15 }
0x10e7   :  { %v1434_v7 = vpop.xlane.xlu1 %1433 }
0x10e8   :  { %1641 = vrcp.f32 %v1434_v7  ;;  %v1448_v38 = vand.u32 2147483648, %v1434_v7  ;;  %v1446_v37 = vand.u32 2147483647, %v1434_v7  ;;  %vm1442_vm13 = vweird.f32 %v1434_v7 }
0x10ea   :  { %v1449_v53 = vor.u32 1.1754944e-38, %v1448_v38  ;;  %vm1447_vm15 = vcmp.eq.f32.partialorder %v1446_v37, 8.507059e+37 }
0x10ee   :  { %v1642_v8 = vpop.eup %1641 }
0x10ef   :  { %v1438_v11 = vmul.f32 %v1642_v8, %v1434_v7  ;;  %v1436_v44 = vpop.xlane.xlu1 %1435  ;;  %vm1443_vm2 = vweird.f32 %v1642_v8 }
0x10f0   :  { %1643 = vrcp.f32 %v1436_v44  ;;  %vm1444_vm14 = vmor %vm1442_vm13, %vm1443_vm2  ;;  %v1463_v60 = vand.u32 2147483648, %v1436_v44  ;;  %v1461_v62 = vand.u32 2147483647, %v1436_v44  ;;  %vm1457_vm1 = vweird.f32 %v1436_v44 }
0x10f1   :  { %v1439_v16 = vsub.f32 1.0, %v1438_v11 }
0x10f2   :  { %v1464_v2 = vor.u32 1.1754944e-38, %v1463_v60  ;;  %vm1462_vm4 = vcmp.eq.f32.partialorder %v1461_v62, 8.507059e+37 }
0x10f3   :  { %v1440_v36 = vmul.f32 %v1642_v8, %v1439_v16 }
0x10f5   :  { %v1441_v40 = vadd.f32 %v1642_v8, %v1440_v36 }
0x10f6   :  { %v1644_v33 = vpop.eup %1643 }
0x10f7   :  { %v1445_v29 = vsel %vm1444_vm14, %v1642_v8, %v1441_v40  ;;  %v1453_v30 = vmul.f32 %v1644_v33, %v1436_v44  ;;  %vm1458_vm0 = vweird.f32 %v1644_v33 }
0x10f8   :  { %v1450_v41 = vsel %vm1447_vm15, %v1449_v53, %v1445_v29  ;;  %vm1459_vm3 = vmor %vm1457_vm1, %vm1458_vm0 }
0x10f9   :  { %v1451_v54 = vmul.f32 %v1638_v48, %v1450_v41  ;;  %v1454_v59 = vsub.f32 1.0, %v1453_v30 }
0x10fb   :  { %1467 = vst [vmem:[%s2652_s4] sm:$0xff] %v1451_v54  ;;  %v1455_v61 = vmul.f32 %v1644_v33, %v1454_v59 }
0x10fd   :  { %v1456_v0 = vadd.f32 %v1644_v33, %v1455_v61 }
0x10ff   :  { %v1460_v4 = vsel %vm1459_vm3, %v1644_v33, %v1456_v0 }
0x1100   :  { %v1465_v10 = vsel %vm1462_vm4, %v1464_v2, %v1460_v4 }
0x1101   :  { %v1466_v18 = vmul.f32 %v1640_v15, %v1465_v10 }
0x1103   :  { %1468 = vst [vmem:[%s2652_s4 + $0x8] sm:$0xff] %v1466_v18 }

</bundles_post_ra>
